<compile_context>
chip_gen: v7x
topology: tpu7x:2x2x1
jax: 0.10.0
libtpu: 0.0.40
codegen_flags: <defaults>
</compile_context>

<pallas_src>
import functools
import math

import jax
import jax.numpy as jnp
from jax.experimental import pallas as pl
from jax.experimental.pallas import tpu as pltpu

_EPS = 1e-5
_PARALLEL = pltpu.CompilerParams(dimension_semantics=("parallel",))


def _rep(shape):
    """Weight/bias block that is resident (same block) for every grid step."""
    return pl.BlockSpec(shape, lambda b: (0,) * len(shape))


def _layernorm(x, g, b, eps=_EPS):
    mean = jnp.mean(x, axis=-1, keepdims=True)
    var = jnp.mean(jnp.square(x - mean), axis=-1, keepdims=True)
    return (x - mean) * jax.lax.rsqrt(var + eps) * g + b


# ------------------------------------------------------------------------
# Kernel 1: CNN stand-in + 1x1 conv to hidden + positional encoding.
# One grid step = one batch element (all s frames processed together).
# ------------------------------------------------------------------------
def _cnn_token_kernel(patch_ref, sw_ref, sb_ref, pw_ref, pb_ref,
                      cw_ref, cb_ref, pe_ref, o_ref):
    blk = patch_ref[...]                                   # (1, s, P, Kpad) bf16
    _, s, P, K = blk.shape
    p2 = blk.reshape(s * P, K)

    feat = jnp.dot(p2, sw_ref[...], preferred_element_type=jnp.float32)
    feat = jnp.maximum(feat + sb_ref[...], 0.0)            # 7x7/s2 conv + relu
    feat = jnp.dot(feat.astype(jnp.bfloat16), pw_ref[...],
                   preferred_element_type=jnp.float32)
    feat = jnp.maximum(feat + pb_ref[...], 0.0)            # 1x1 -> 512 + relu

    gap = jnp.mean(feat.reshape(s, P, feat.shape[-1]), axis=1)   # (s, 512)

    emb = jnp.dot(gap.astype(jnp.bfloat16), cw_ref[...],
                  preferred_element_type=jnp.float32)
    emb = jnp.maximum(emb + cb_ref[...], 0.0)              # conv(512->hidden)+relu

    tok = emb + pe_ref[...]                                # + scale*pe (pre-scaled)
    o_ref[...] = tok.reshape(1, s, tok.shape[-1]).astype(o_ref.dtype)


def cnn_tokens(patches, stem_w, stem_b, proj_w, proj_b, conv_w, conv_b, pe_scaled):
    bs, s, P, Kpad = patches.shape
    hidden = conv_w.shape[1]
    return pl.pallas_call(
        _cnn_token_kernel,
        out_shape=jax.ShapeDtypeStruct((bs, s, hidden), jnp.bfloat16),
        grid=(bs,),
        in_specs=[
            pl.BlockSpec((1, s, P, Kpad), lambda b: (b, 0, 0, 0)),
            _rep(stem_w.shape), _rep(stem_b.shape),
            _rep(proj_w.shape), _rep(proj_b.shape),
            _rep(conv_w.shape), _rep(conv_b.shape),
            _rep(pe_scaled.shape),
        ],
        out_specs=pl.BlockSpec((1, s, hidden), lambda b: (b, 0, 0)),
        compiler_params=_PARALLEL,
    )(patches, stem_w, stem_b, proj_w, proj_b, conv_w, conv_b, pe_scaled)


# ------------------------------------------------------------------------
# Kernel 2: one full transformer encoder layer (post-norm, relu) per batch.
# ------------------------------------------------------------------------
def _encoder_layer_kernel(x_ref, wqkv_ref, bqkv_ref, wout_ref, bout_ref,
                          g1_ref, be1_ref, wf1_ref, bf1_ref, wf2_ref, bf2_ref,
                          g2_ref, be2_ref, o_ref, *, nhead, scale):
    xb = x_ref[...]                                        # (1, s, H) bf16
    _, s, H = xb.shape
    x = xb.reshape(s, H)
    xf = x.astype(jnp.float32)
    hd = H // nhead

    qkv = jnp.dot(x, wqkv_ref[...],
                  preferred_element_type=jnp.float32) + bqkv_ref[...]   # (s, 3H)

    attn = None
    for h in range(nhead):
        q = (qkv[:, h * hd:(h + 1) * hd] * scale).astype(jnp.bfloat16)
        k = qkv[:, H + h * hd:H + (h + 1) * hd].astype(jnp.bfloat16)
        v = qkv[:, 2 * H + h * hd:2 * H + (h + 1) * hd].astype(jnp.bfloat16)
        sc = jax.lax.dot_general(q, k, (((1,), (1,)), ((), ())),
                                 preferred_element_type=jnp.float32)    # (s, s)
        m = jnp.max(sc, axis=-1, keepdims=True)
        p = jnp.exp(sc - m)
        l = jnp.sum(p, axis=-1, keepdims=True)
        o_h = jnp.dot(p.astype(jnp.bfloat16), v,
                      preferred_element_type=jnp.float32)
        o_h = o_h * pl.reciprocal(l, approx=True)          # (s, hd)
        # project this head with the matching row-slice of w_out and accumulate
        contrib = jnp.dot(o_h.astype(jnp.bfloat16),
                          wout_ref[h * hd:(h + 1) * hd, :],
                          preferred_element_type=jnp.float32)
        attn = contrib if attn is None else attn + contrib
    attn = attn + bout_ref[...]

    y = _layernorm(attn + xf, g1_ref[...], be1_ref[...])   # residual + LN1 (f32)

    h1 = jnp.dot(y.astype(jnp.bfloat16), wf1_ref[...],
                 preferred_element_type=jnp.float32) + bf1_ref[...]
    h1 = jnp.maximum(h1, 0.0)
    h2 = jnp.dot(h1.astype(jnp.bfloat16), wf2_ref[...],
                 preferred_element_type=jnp.float32) + bf2_ref[...]

    z = _layernorm(h2 + y, g2_ref[...], be2_ref[...])      # residual + LN2 (f32)
    o_ref[...] = z.reshape(1, s, H).astype(o_ref.dtype)


def encoder_layer(x, lyr, nhead, scale):
    bs, s, hidden = x.shape
    bf16, f32 = jnp.bfloat16, jnp.float32

    def row(v):
        return v.reshape(1, -1).astype(f32)

    args = (x,
            lyr["w_qkv"].astype(bf16), row(lyr["b_qkv"]),
            lyr["w_out"].astype(bf16), row(lyr["b_out"]),
            row(lyr["ln1_g"]), row(lyr["ln1_b"]),
            lyr["w_ff1"].astype(bf16), row(lyr["b_ff1"]),
            lyr["w_ff2"].astype(bf16), row(lyr["b_ff2"]),
            row(lyr["ln2_g"]), row(lyr["ln2_b"]))

    in_specs = [pl.BlockSpec((1, s, hidden), lambda b: (b, 0, 0))] + \
               [_rep(a.shape) for a in args[1:]]

    return pl.pallas_call(
        functools.partial(_encoder_layer_kernel, nhead=nhead, scale=scale),
        out_shape=jax.ShapeDtypeStruct((bs, s, hidden), jnp.bfloat16),
        grid=(bs,),
        in_specs=in_specs,
        out_specs=pl.BlockSpec((1, s, hidden), lambda b: (b, 0, 0)),
        compiler_params=_PARALLEL,
    )(*args)


# ------------------------------------------------------------------------
# Kernel 3: final LayerNorm + max over sequence + fc (lane-padded output).
# ------------------------------------------------------------------------
def _head_kernel(x_ref, g_ref, b_ref, w_ref, bias_ref, o_ref):
    xb = x_ref[...]                                        # (1, s, H) bf16
    _, s, H = xb.shape
    x = xb.reshape(s, H).astype(jnp.float32)
    xn = _layernorm(x, g_ref[...], b_ref[...])
    pooled = jnp.max(xn, axis=0, keepdims=True)            # (1, H) torch.max(out,0)[0]
    logits = jnp.dot(pooled.astype(jnp.bfloat16), w_ref[...],
                     preferred_element_type=jnp.float32) + bias_ref[...]
    o_ref[...] = logits.reshape(1, 1, logits.shape[-1])


def head(x, norm_g, norm_b, fc_w_pad, fc_b_pad, num_classes):
    bs, s, hidden = x.shape
    npad = fc_w_pad.shape[1]
    out = pl.pallas_call(
        _head_kernel,
        out_shape=jax.ShapeDtypeStruct((bs, 1, npad), jnp.float32),
        grid=(bs,),
        in_specs=[pl.BlockSpec((1, s, hidden), lambda b: (b, 0, 0)),
                  _rep(norm_g.shape), _rep(norm_b.shape),
                  _rep(fc_w_pad.shape), _rep(fc_b_pad.shape)],
        out_specs=pl.BlockSpec((1, 1, npad), lambda b: (b, 0, 0)),
        compiler_params=_PARALLEL,
    )(x, norm_g, norm_b, fc_w_pad, fc_b_pad)
    return out.reshape(bs, npad)[:, :num_classes]


# ---------------------------- glue / model ----------------------------

def im2col_7x7_s2_p3(x_nhwc):
    # (N, H, W, C) -> (N, Ho, Wo, 7*7*C), stride 2, pad 3
    N, H, W, C = x_nhwc.shape
    xp = jnp.pad(x_nhwc, ((0, 0), (3, 3), (3, 3), (0, 0)))
    Ho = (H + 6 - 7) // 2 + 1
    Wo = (W + 6 - 7) // 2 + 1
    cols = []
    for dy in range(7):
        for dx in range(7):
            cols.append(xp[:, dy:dy + 2 * Ho - 1:2, dx:dx + 2 * Wo - 1:2, :])
    return jnp.concatenate(cols, axis=-1), Ho, Wo


def make_pe(max_len, d_model):
    position = jnp.arange(max_len, dtype=jnp.float32)[:, None]
    div_term = jnp.exp(jnp.arange(0, d_model, 2, dtype=jnp.float32)
                       * (-math.log(10000.0) / d_model))
    pe = jnp.zeros((max_len, d_model), jnp.float32)
    pe = pe.at[:, 0::2].set(jnp.sin(position * div_term))
    pe = pe.at[:, 1::2].set(jnp.cos(position * div_term))
    return pe[:, None, :]  # (max_len, 1, d_model)


def init_params(key, hidden, nhead, dff, nlayers, num_classes, in_ch=3):
    ks = jax.random.split(key, 8 + nlayers)

    def nrm(k, shape, scale=0.05):
        return scale * jax.random.normal(k, shape, dtype=jnp.float32)

    params = {
        # CNN stand-in (see TODO at top)
        "stem_w": nrm(ks[0], (7 * 7 * in_ch, 64)),
        "stem_b": jnp.zeros((64,), jnp.float32),
        "proj_w": nrm(ks[1], (64, 512)),
        "proj_b": jnp.zeros((512,), jnp.float32),
        # self.conv = nn.Conv2d(512, hidden, 1) acting on 1x1 spatial -> matmul
        "conv_w": nrm(ks[2], (512, hidden)),
        "conv_b": nrm(ks[3], (hidden,)),
        # PositionalEncoding buffers / params
        "pe": make_pe(5000, hidden),
        "pe_scale": jnp.ones((1,), jnp.float32),
        # final encoder LayerNorm
        "norm_g": jnp.ones((hidden,), jnp.float32),
        "norm_b": jnp.zeros((hidden,), jnp.float32),
        # self.fc = nn.Linear(hidden, num_classes)
        "fc_w": nrm(ks[4], (hidden, num_classes)),
        "fc_b": nrm(ks[5], (num_classes,)),
        "layers": [],
    }
    for l in range(nlayers):
        lk = jax.random.split(ks[8 + l], 8)
        params["layers"].append({
            "w_qkv": nrm(lk[0], (hidden, 3 * hidden)),  # in_proj_weight.T
            "b_qkv": nrm(lk[1], (3 * hidden,)),
            "w_out": nrm(lk[2], (hidden, hidden)),
            "b_out": nrm(lk[3], (hidden,)),
            "w_ff1": nrm(lk[4], (hidden, dff)),
            "b_ff1": nrm(lk[5], (dff,)),
            "w_ff2": nrm(lk[6], (dff, hidden)),
            "b_ff2": nrm(lk[7], (hidden,)),
            "ln1_g": jnp.ones((hidden,), jnp.float32),
            "ln1_b": jnp.zeros((hidden,), jnp.float32),
            "ln2_g": jnp.ones((hidden,), jnp.float32),
            "ln2_b": jnp.zeros((hidden,), jnp.float32),
        })
    return params


def cnn_transformer_forward(params, frames, hidden, nhead):
    bs, s, c, H, W = frames.shape
    bf16, f32 = jnp.bfloat16, jnp.float32

    # ---- per-frame CNN encoder + conv(512->hidden) + relu + posenc ----
    x = frames.reshape(bs * s, c, H, W).transpose(0, 2, 3, 1)        # NCHW -> NHWC
    patches, Ho, Wo = im2col_7x7_s2_p3(x)
    P = Ho * Wo
    K = 7 * 7 * c
    Kpad = ((K + 127) // 128) * 128                                  # dense / MXU-friendly K
    patches = patches.reshape(bs, s, P, K)
    patches = jnp.pad(patches, ((0, 0), (0, 0), (0, 0), (0, Kpad - K))).astype(bf16)

    stem_w = jnp.pad(params["stem_w"], ((0, Kpad - K), (0, 0))).astype(bf16)
    stem_b = params["stem_b"].reshape(1, -1).astype(f32)
    proj_w = params["proj_w"].astype(bf16)
    proj_b = params["proj_b"].reshape(1, -1).astype(f32)
    conv_w = params["conv_w"].astype(bf16)
    conv_b = params["conv_b"].reshape(1, -1).astype(f32)
    # pre-apply the learned scale so the kernel just adds (no (s,bs,H) broadcast in HBM)
    pe_scaled = (params["pe_scale"][0] * params["pe"][:s, 0, :]).astype(f32)   # (s, hidden)

    tokens = cnn_tokens(patches, stem_w, stem_b, proj_w, proj_b,
                        conv_w, conv_b, pe_scaled)                   # (bs, s, hidden) bf16

    # ---- TransformerEncoder (post-norm layers, relu activation) ----
    hd = hidden // nhead
    scale = 1.0 / math.sqrt(hd)
    x = tokens
    for lyr in params["layers"]:
        x = encoder_layer(x, lyr, nhead, scale)

    # ---- final encoder_norm + fc(max(out, dim=seq)) ----
    num_classes = params["fc_w"].shape[1]
    npad = ((num_classes + 127) // 128) * 128
    fc_w_pad = jnp.pad(params["fc_w"], ((0, 0), (0, npad - num_classes))).astype(bf16)
    fc_b_pad = jnp.pad(params["fc_b"], (0, npad - num_classes)).reshape(1, npad).astype(f32)
    norm_g = params["norm_g"].reshape(1, -1).astype(f32)
    norm_b = params["norm_b"].reshape(1, -1).astype(f32)

    return head(x, norm_g, norm_b, fc_w_pad, fc_b_pad, num_classes)  # (bs, num_classes)


if __name__ == "__main__":
    bs, s, c, H, W = 2, 4, 3, 16, 16
    hidden, nhead, dff, nlayers, num_classes = 32, 4, 64, 2, 5

    key = jax.random.PRNGKey(0)
    pkey, xkey = jax.random.split(key)
    params = init_params(pkey, hidden, nhead, dff, nlayers, num_classes, in_ch=c)
    frames = jax.random.normal(xkey, (bs, s, c, H, W), dtype=jnp.float32)

    out = cnn_transformer_forward(params, frames, hidden, nhead)
    out = jax.block_until_ready(out)
    assert out.shape == (bs, num_classes), out.shape
    assert bool(jnp.all(jnp.isfinite(out)))
    print("KERNEL_OK")
</pallas_src>

<mosaic_0001>
module attributes {stable_mosaic.version = 11 : i64} {
  func.func @_cnn_token_kernel(%arg0: i32, %arg1: memref<1x4x64x256xbf16, #tpu.memory_space<vmem>>, %arg2: memref<256x64xbf16, #tpu.memory_space<vmem>>, %arg3: memref<1x64xf32, #tpu.memory_space<vmem>>, %arg4: memref<64x512xbf16, #tpu.memory_space<vmem>>, %arg5: memref<1x512xf32, #tpu.memory_space<vmem>>, %arg6: memref<512x32xbf16, #tpu.memory_space<vmem>>, %arg7: memref<1x32xf32, #tpu.memory_space<vmem>>, %arg8: memref<4x32xf32, #tpu.memory_space<vmem>>, %arg9: memref<1x4x32xbf16, #tpu.memory_space<vmem>>) attributes {dimension_semantics = [#tpu.dimension_semantics<parallel>], iteration_bounds = array<i64: 2>, scalar_prefetch = 0 : i64, scratch_operands = 0 : i64, tpu.core_type = #tpu.core_type<tc>, window_params = [{transform_indices = @transform_0, window_bounds = array<i64: 1, 4, 64, 256>}, {pipeline_mode = #tpu.pipeline_mode<synchronous>, transform_indices = @transform_1, window_bounds = array<i64: 256, 64>}, {pipeline_mode = #tpu.pipeline_mode<synchronous>, transform_indices = @transform_2, window_bounds = array<i64: 1, 64>}, {pipeline_mode = #tpu.pipeline_mode<synchronous>, transform_indices = @transform_3, window_bounds = array<i64: 64, 512>}, {pipeline_mode = #tpu.pipeline_mode<synchronous>, transform_indices = @transform_4, window_bounds = array<i64: 1, 512>}, {pipeline_mode = #tpu.pipeline_mode<synchronous>, transform_indices = @transform_5, window_bounds = array<i64: 512, 32>}, {pipeline_mode = #tpu.pipeline_mode<synchronous>, transform_indices = @transform_6, window_bounds = array<i64: 1, 32>}, {pipeline_mode = #tpu.pipeline_mode<synchronous>, transform_indices = @transform_7, window_bounds = array<i64: 4, 32>}, {transform_indices = @transform_8, window_bounds = array<i64: 1, 4, 32>}]} {
    %c0 = arith.constant 0 : index
    %c0_0 = arith.constant 0 : index
    %c0_1 = arith.constant 0 : index
    %c0_2 = arith.constant 0 : index
    %0 = vector.load %arg1[%c0, %c0_0, %c0_1, %c0_2] : memref<1x4x64x256xbf16, #tpu.memory_space<vmem>>, vector<1x4x64x256xbf16>
    %1 = vector.shape_cast %0 : vector<1x4x64x256xbf16> to vector<256x256xbf16>
    %c0_3 = arith.constant 0 : index
    %c0_4 = arith.constant 0 : index
    %2 = vector.load %arg2[%c0_3, %c0_4] : memref<256x64xbf16, #tpu.memory_space<vmem>>, vector<256x64xbf16>
    %cst = arith.constant dense<0.000000e+00> : vector<256x64xf32>
    %3 = tpu.matmul %1, %2, %cst {dimension_numbers = #tpu.dot_dimension_numbers<[1], [0], [0], [1], [0, 0, 1, 1], [], []>} : vector<256x256xbf16>, vector<256x64xbf16>, vector<256x64xf32> -> vector<256x64xf32>
    %c0_5 = arith.constant 0 : index
    %c0_6 = arith.constant 0 : index
    %4 = vector.load %arg3[%c0_5, %c0_6] : memref<1x64xf32, #tpu.memory_space<vmem>>, vector<1x64xf32>
    %5 = vector.broadcast %4 : vector<1x64xf32> to vector<256x64xf32>
    %6 = arith.addf %3, %5 : vector<256x64xf32>
    %cst_7 = arith.constant 0.000000e+00 : f32
    %7 = vector.broadcast %cst_7 : f32 to vector<256x64xf32>
    %8 = arith.maximumf %6, %7 : vector<256x64xf32>
    %9 = arith.truncf %8 : vector<256x64xf32> to vector<256x64xbf16>
    %c0_8 = arith.constant 0 : index
    %c0_9 = arith.constant 0 : index
    %10 = vector.load %arg4[%c0_8, %c0_9] : memref<64x512xbf16, #tpu.memory_space<vmem>>, vector<64x512xbf16>
    %cst_10 = arith.constant dense<0.000000e+00> : vector<256x512xf32>
    %11 = tpu.matmul %9, %10, %cst_10 {dimension_numbers = #tpu.dot_dimension_numbers<[1], [0], [0], [1], [0, 0, 1, 1], [], []>} : vector<256x64xbf16>, vector<64x512xbf16>, vector<256x512xf32> -> vector<256x512xf32>
    %c0_11 = arith.constant 0 : index
    %c0_12 = arith.constant 0 : index
    %12 = vector.load %arg5[%c0_11, %c0_12] : memref<1x512xf32, #tpu.memory_space<vmem>>, vector<1x512xf32>
    %13 = vector.broadcast %12 : vector<1x512xf32> to vector<256x512xf32>
    %14 = arith.addf %11, %13 : vector<256x512xf32>
    %cst_13 = arith.constant 0.000000e+00 : f32
    %15 = vector.broadcast %cst_13 : f32 to vector<256x512xf32>
    %16 = arith.maximumf %14, %15 : vector<256x512xf32>
    %17 = vector.shape_cast %16 : vector<256x512xf32> to vector<4x64x512xf32>
    %cst_14 = arith.constant dense<0.000000e+00> : vector<4x512xf32>
    %18 = vector.multi_reduction <add>, %17, %cst_14 [1] : vector<4x64x512xf32> to vector<4x512xf32>
    %cst_15 = arith.constant 6.400000e+01 : f32
    %19 = vector.broadcast %cst_15 : f32 to vector<4x512xf32>
    %20 = arith.divf %18, %19 : vector<4x512xf32>
    %21 = arith.truncf %20 : vector<4x512xf32> to vector<4x512xbf16>
    %c0_16 = arith.constant 0 : index
    %c0_17 = arith.constant 0 : index
    %22 = vector.load %arg6[%c0_16, %c0_17] : memref<512x32xbf16, #tpu.memory_space<vmem>>, vector<512x32xbf16>
    %cst_18 = arith.constant dense<0.000000e+00> : vector<4x32xf32>
    %23 = tpu.matmul %21, %22, %cst_18 {dimension_numbers = #tpu.dot_dimension_numbers<[1], [0], [0], [1], [0, 0, 1, 1], [], []>} : vector<4x512xbf16>, vector<512x32xbf16>, vector<4x32xf32> -> vector<4x32xf32>
    %c0_19 = arith.constant 0 : index
    %c0_20 = arith.constant 0 : index
    %24 = vector.load %arg7[%c0_19, %c0_20] : memref<1x32xf32, #tpu.memory_space<vmem>>, vector<1x32xf32>
    %25 = vector.broadcast %24 : vector<1x32xf32> to vector<4x32xf32>
    %26 = arith.addf %23, %25 : vector<4x32xf32>
    %cst_21 = arith.constant 0.000000e+00 : f32
    %27 = vector.broadcast %cst_21 : f32 to vector<4x32xf32>
    %28 = arith.maximumf %26, %27 : vector<4x32xf32>
    %c0_22 = arith.constant 0 : index
    %c0_23 = arith.constant 0 : index
    %29 = vector.load %arg8[%c0_22, %c0_23] : memref<4x32xf32, #tpu.memory_space<vmem>>, vector<4x32xf32>
    %30 = arith.addf %28, %29 : vector<4x32xf32>
    %31 = vector.shape_cast %30 : vector<4x32xf32> to vector<1x4x32xf32>
    %32 = arith.truncf %31 : vector<1x4x32xf32> to vector<1x4x32xbf16>
    %c0_24 = arith.constant 0 : index
    %c0_25 = arith.constant 0 : index
    %c0_26 = arith.constant 0 : index
    %33 = vector.load %arg9[%c0_24, %c0_25, %c0_26] : memref<1x4x32xbf16, #tpu.memory_space<vmem>>, vector<1x4x32xbf16>
    tpu.vector_store %arg9[%c0_24, %c0_25, %c0_26], %32 {strides = array<i32>} : memref<1x4x32xbf16, #tpu.memory_space<vmem>>, vector<1x4x32xbf16>,
    return
  }
  func.func @transform_0(%arg0: i32) -> (i32, i32, i32, i32) {
    %c0_i32 = arith.constant 0 : i32
    %c0_i32_0 = arith.constant 0 : i32
    %c0_i32_1 = arith.constant 0 : i32
    %c0_i32_2 = arith.constant 0 : i32
    return %arg0, %c0_i32, %c0_i32_0, %c0_i32_1 : i32, i32, i32, i32
  }
  func.func @transform_1(%arg0: i32) -> (i32, i32) {
    %c0_i32 = arith.constant 0 : i32
    %c0_i32_0 = arith.constant 0 : i32
    %c0_i32_1 = arith.constant 0 : i32
    return %c0_i32, %c0_i32_0 : i32, i32
  }
  func.func @transform_2(%arg0: i32) -> (i32, i32) {
    %c0_i32 = arith.constant 0 : i32
    %c0_i32_0 = arith.constant 0 : i32
    %c0_i32_1 = arith.constant 0 : i32
    return %c0_i32, %c0_i32_0 : i32, i32
  }
  func.func @transform_3(%arg0: i32) -> (i32, i32) {
    %c0_i32 = arith.constant 0 : i32
    %c0_i32_0 = arith.constant 0 : i32
    %c0_i32_1 = arith.constant 0 : i32
    return %c0_i32, %c0_i32_0 : i32, i32
  }
  func.func @transform_4(%arg0: i32) -> (i32, i32) {
    %c0_i32 = arith.constant 0 : i32
    %c0_i32_0 = arith.constant 0 : i32
    %c0_i32_1 = arith.constant 0 : i32
    return %c0_i32, %c0_i32_0 : i32, i32
  }
  func.func @transform_5(%arg0: i32) -> (i32, i32) {
    %c0_i32 = arith.constant 0 : i32
    %c0_i32_0 = arith.constant 0 : i32
    %c0_i32_1 = arith.constant 0 : i32
    return %c0_i32, %c0_i32_0 : i32, i32
  }
  func.func @transform_6(%arg0: i32) -> (i32, i32) {
    %c0_i32 = arith.constant 0 : i32
    %c0_i32_0 = arith.constant 0 : i32
    %c0_i32_1 = arith.constant 0 : i32
    return %c0_i32, %c0_i32_0 : i32, i32
  }
  func.func @transform_7(%arg0: i32) -> (i32, i32) {
    %c0_i32 = arith.constant 0 : i32
    %c0_i32_0 = arith.constant 0 : i32
    %c0_i32_1 = arith.constant 0 : i32
    return %c0_i32, %c0_i32_0 : i32, i32
  }
  func.func @transform_8(%arg0: i32) -> (i32, i32, i32) {
    %c0_i32 = arith.constant 0 : i32
    %c0_i32_0 = arith.constant 0 : i32
    %c0_i32_1 = arith.constant 0 : i32
    return %arg0, %c0_i32, %c0_i32_0 : i32, i32, i32
  }
}

</mosaic_0001>

<bundles_post_ra>
// kernel: tpu_custom_call.1
= control target key start
LH: loop header
LB: loop body
LE: loop exit
PB: predicated region body
PF: predicated region fallthrough
CT: control target
= control target key end

     0   :  { %13 = vsyncpa [#allocation3], 0  ;;  %s3567_s0 = inlined_call_operand.vmem [shape: bf16[2,4,64,256], index: 0, kind: input, shape index: {}]   ;;  %s3568_s1 = inlined_call_operand.vmem [shape: bf16[256,64], index: 1, kind: input, shape index: {}]   ;;  %s3569_s2 = inlined_call_operand.vmem [shape: f32[1,64], index: 2, kind: input, shape index: {}]   ;;  %s3570_s3 = inlined_call_operand.hbm [shape: bf16[64,512], index: 3, kind: input, shape index: {}]   ;;  %s3571_s4 = inlined_call_operand.vmem [shape: f32[1,512], index: 4, kind: input, shape index: {}]   ;;  %s3572_s5 = inlined_call_operand.vmem [shape: bf16[512,32], index: 5, kind: input, shape index: {}]   ;;  %s3573_s6 = inlined_call_operand.vmem [shape: f32[1,32], index: 6, kind: input, shape index: {}]   ;;  %s3574_s7 = inlined_call_operand.vmem [shape: f32[4,32], index: 7, kind: input, shape index: {}]   ;;  %s3575_s8 = inlined_call_operand.hbm [shape: bf16[2,4,32], index: 8, kind: output, shape index: {}]  }
   0x1   :  { %14 = vsyncpa [#allocation4], 0 }
   0x2   :  { %16 = vsyncpa [#allocation4 + $0x1], 0  ;;  %s2894_s27 = smov 0   ;;  %s2896_s28 = smov 0  }
   0x3   :  { %s2898_s29 = smov 0   ;;  %s2900_s30 = smov 0  }
   0x4 LB: > { %s2915_s9 = sadd.s32 4294967295, %s2842_s30   ;;  %s2267_s10 = sadd.s32 4294967294, %s2842_s30   ;;  %s2842_s30 = sphi %s2900_s30, %s3591_s30   ;;  %s2838_s29 = sphi %s2898_s29, %s3590_s29   ;;  %s2834_s28 = sphi %s2896_s28, %s3589_s28   ;;  %s2830_s27 = sphi %s2894_s27, %s3588_s27  }
   0x5   : > { %s2919_s11 = sadd.s32 1, %s2842_s30   ;;  %s202_s12 = sadd.s32 1, %s2838_s29 }
   0x6   : > { %s199_s13 = ssub.s32 %s2842_s30, %s2919_s11  ;;  %p212_p0 = scmp.ne.s32.totalorder %s2838_s29, %s2834_s28 }
   0x7   : > { %p200_p1 = scmp.eq.s32.totalorder %s199_s13, 0  ;;  %p213_p2 = scmp.eq.s32.totalorder %s2915_s9, 1 }
   0x8   : > { %p218_p3 = scmp.ne.s32.totalorder %s2834_s28, %s2830_s27  ;;  %p219_p4 = scmp.eq.s32.totalorder %s2267_s10, 1 }
   0x9   : > { %s2930_s14 = scalar_select %p200_p1, %s2838_s29, %s202_s12  }
   0xa   : > { %p2932_p5 = por %p213_p2, %p212_p0  ;;  %p2936_p6 = por %p219_p4, %p218_p3 }
   0xb   : > { %p2268_p7 = scmp.ge.s32.totalorder %s2842_s30, 1  ;;  %p226_p8 = scmp.lt.s32.totalorder %s2842_s30, 3 }
   0xc   : > { %s3579_s15 = scalar_select %p2932_p5, 1, 0 }
   0xd   : > { %s3580_s16 = scalar_select %p2936_p6, 1, 0 }
   0xe   : > { %p3576_p9 = scmp.eq.s32.totalorder %s2915_s9, 0  ;;  %p2943_p10 = pnand %p2268_p7, %p226_p8 }
   0xf   : > { %s2844_s18 = smov [#allocation2]   ;;  %s2748_s23 = scalar_lea.hbm %s3570_s3, 2048 }
  0x10   : > { %s3581_s17 = scalar_select %p2943_p10, 1, 0 }
  0x11   : > { %s244_s19 = sshll.u32 %s2844_s18, 4  ;;  %p2581_p11 = pneg %p2943_p10  ;;  %s245_s19 = int_to_ptr.vmem [resolvable:$true] %s244_s19 }
  0x12   : > { %p2749_p13 = scmp.ne.s32.totalorder %s3570_s3, %s2748_s23  ;;  %p2755_p3 = scmp.lt.u32.totalorder %s2748_s23, %s3570_s3 }
  0x13   : > { %p2951_p12 = pnand %p3576_p9, %p2581_p11 }
  0x15   : > { %p2750_p0 = pneg %p2951_p12 }
  0x17   : > { %p2751_p1 = pnand %p2750_p0, %p2749_p13 }
  0x19   : > { %p2752_p2 = pneg %p2751_p1 }
  0x1b   : > { %p2757_p4 = pnand %p2755_p3, %p2752_p2 }
  0x1d   : > { %2760 = shalt.err (!%p2757_p4)
}
  0x1e   : > { %s2761_s12 = scalar_lea.vmem %s245_s19, 2048  ;;  %p2769_p9 = scmp.lt.s32.totalorder %s245_s19, %s245_s19 }
  0x1f   : > { %p2762_p7 = scmp.ne.s32.totalorder %s245_s19, %s2761_s12  ;;  %p2770_p6 = scmp.lt.s32.totalorder %s2761_s12, %s2761_s12 }
  0x21   : > { %p2764_p8 = pnand %p2762_p7, %p2750_p0  ;;  %p2771_p5 = por %p2770_p6, %p2769_p9 }
  0x23   : > { %p2765_p11 = pneg %p2764_p8 }
  0x25   : > { %p2772_p10 = pnand %p2771_p5, %p2765_p11 }
  0x27   : > { %2775 = shalt.err (!%p2772_p10)
}
  0x28   : > { %s2845_s13 = smov 256   ;;  %s2846_s18 = smov 16  }
  0x29   : > { %2584 = dma.hbm_to_vmem [thread:$0]  (!%p2951_p12), %s3570_s3, 2048, %s245_s19, [#allocation3], %s2845_s13, %s2845_s13, %s2846_s18  }
  0x2a   : > { %p3583_p13 = scmp.ne.s32.totalorder %s3581_s17, 0 }
  0x2b   : > { %p3584_p1 = scmp.eq.s32.totalorder (!%p3583_p13), %s2915_s9, 0 }
  0x2c   : > { %280 = sbr.rel (%p3583_p13) target bundleno = 1036 (0x40c), region = 52 }
  0x33   : > { %2821 = dma.done.wait (%p3584_p1), [#allocation3], 2048   ;;  %p3585_p0 = pmov %p3584_p1 }
  0x34   : > { %v2628_v0 = vld [vmem:[%s3568_s1 + $0x40] sm:$0xff]   ;;  %v2630_v2 = vld [vmem:[%s3568_s1 + $0x48] sm:$0xff]   ;;  %p314_p5 = scmp.lt.s32.totalorder %s2915_s9, 1  ;;  %v2632_v4 = vld [vmem:[%s3568_s1 + $0x50] sm:$0xff]   ;;  %v2847_v51 = vmov 0   ;;  %vm974_vm0 = vcmask 523264  }
  0x35   : > { %2823 = vsyncadd (%p3585_p0), [#allocation3], 4294965248  ;;  %v2629_v1 = vld [vmem:[%s3568_s1] sm:$0xff]   ;;  %2411 = vmatprep.subr.bf16.mxu0 %v2628_v0  ;;  %v2631_v3 = vld [vmem:[%s3568_s1 + $0x8] sm:$0xff]   ;;  %1095 = vmatprep.mubr.bf16.mxu1 %v2847_v51  ;;  %vm1881_vm1 = vcmask 1041409   ;;  %vm1883_vm2 = vcmask 1042434  }
  0x36   : > { %2412 = vmatpush3.bf16.msra.mxu0 %v2629_v1  ;;  %v2633_v5 = vld [vmem:[%s3568_s1 + $0x10] sm:$0xff]   ;;  %s315_s22 = scalar_select %p314_p5, %s2915_s9, 1  ;;  %v2634_v6 = vld [vmem:[%s3568_s1 + $0x58] sm:$0xff]   ;;  %v2636_v8 = vld [vmem:[%s3568_s1 + $0x60] sm:$0xff]   ;;  %vm1885_vm3 = vcmask 1043459   ;;  %vm2180_vm4 = vcmask 254976  }
  0x37   : > { %2413 = vmatprep.subr.bf16.mxu0 %v2630_v2  ;;  %v2635_v7 = vld [vmem:[%s3568_s1 + $0x18] sm:$0xff]   ;;  %v2637_v9 = vld [vmem:[%s3568_s1 + $0x20] sm:$0xff]   ;;  %v2638_v10 = vld [vmem:[%s3568_s1 + $0x68] sm:$0xff]   ;;  %s311_s24 = sand.u32 1, %s2834_s28   ;;  %s2407_s10 = sshll.u32 %s2915_s9, 5 }
  0x38   : > { %s2410_s19 = sshll.u32 %s315_s22, 8  ;;  %v2639_v12 = vld [vmem:[%s3568_s1 + $0x28] sm:$0xff]   ;;  %v2640_v13 = vld [vmem:[%s3568_s1 + $0x70] sm:$0xff]   ;;  %v2642_v15 = vld [vmem:[%s3568_s1 + $0x78] sm:$0xff]   ;;  %s3525_s22 = scalar_lea.hbm %s3575_s8, %s2407_s10 }
  0x39   : > { %s3009_s13 = scalar_lea.vmem %s3567_s0, %s2410_s19  ;;  %v2641_v14 = vld [vmem:[%s3568_s1 + $0x30] sm:$0xff]   ;;  %v2643_v16 = vld [vmem:[%s3568_s1 + $0x38] sm:$0xff]   ;;  %v3069_v59 = vld [vmem:[%s3569_s2] ss:$0 sm:$0xff]  ;;  %s2273_s19 = sshll.u32 %s311_s24, 1 }
  0x3a   : > { %2414 = vmatpush3.bf16.msra.mxu0 %v2631_v3  ;;  %v2646_v11 = vld [vmem:[%s3009_s13 + $0x4] ss:$8 sps:$4 sm:$0xff]   ;;  %v2644_v17 = vld [vmem:[%s3009_s13] ss:$8 sps:$4 sm:$0xff]   ;;  %v2647_v18 = vld [vmem:[%s3009_s13 + $0x14] ss:$8 sps:$4 sm:$0xff]  }
  0x3b   : > { %2415 = vmatprep.subr.bf16.mxu0 %v2632_v4  ;;  %679 = vmatprep.mubr.bf16.mxu0 %v2646_v11  ;;  %v2649_v19 = vld [vmem:[%s3009_s13 + $0x10] ss:$8 sps:$4 sm:$0xff]   ;;  %v2650_v20 = vld [vmem:[%s3009_s13 + $0x24] ss:$8 sps:$4 sm:$0xff]   ;;  %v2652_v23 = vld [vmem:[%s3009_s13 + $0x20] ss:$8 sps:$4 sm:$0xff]  }
  0x3c   : > { %v2692_v21 = vld [vmem:[#allocation2] ss:$16 sps:$4 sm:$0xff]   ;;  %v2694_v22 = vld [vmem:[#allocation2 + $0x4] ss:$16 sps:$4 sm:$0xff]   ;;  %v2706_v57 = vld [vmem:[#allocation2 + $0xc] ss:$16 sps:$4 sm:$0xff]  }
  0x3d   : > { %2567 = vmatprep.subr.bf16.mxu1 %v2694_v22  ;;  %v2653_v24 = vld [vmem:[%s3009_s13 + $0x34] ss:$8 sps:$4 sm:$0xff]   ;;  %v2655_v25 = vld [vmem:[%s3009_s13 + $0x30] ss:$8 sps:$4 sm:$0xff]   ;;  %v2656_v26 = vld [vmem:[%s3009_s13 + $0x44] ss:$8 sps:$4 sm:$0xff]  }
  0x3e   : > { %2416 = vmatpush3.bf16.msra.mxu0 %v2633_v5  ;;  %2571 = vmatpush1.bf16.msra.mxu1 %v2692_v21  ;;  %v2658_v27 = vld [vmem:[%s3009_s13 + $0x40] ss:$8 sps:$4 sm:$0xff]   ;;  %v2659_v28 = vld [vmem:[%s3009_s13 + $0x54] ss:$8 sps:$4 sm:$0xff]   ;;  %v2661_v29 = vld [vmem:[%s3009_s13 + $0x50] ss:$8 sps:$4 sm:$0xff]  }
  0x3f   : > { %2417 = vmatprep.subr.bf16.mxu0 %v2634_v6  ;;  %v2662_v30 = vld [vmem:[%s3009_s13 + $0x64] ss:$8 sps:$4 sm:$0xff]   ;;  %v2664_v31 = vld [vmem:[%s3009_s13 + $0x60] ss:$8 sps:$4 sm:$0xff]   ;;  %v2665_v32 = vld [vmem:[%s3009_s13 + $0x74] ss:$8 sps:$4 sm:$0xff]  }
  0x40   : > { %v2667_v33 = vld [vmem:[%s3009_s13 + $0x70] ss:$8 sps:$4 sm:$0xff]   ;;  %v2668_v34 = vld [vmem:[%s3009_s13 + $0x84] ss:$8 sps:$4 sm:$0xff]   ;;  %v2670_v35 = vld [vmem:[%s3009_s13 + $0x80] ss:$8 sps:$4 sm:$0xff]  }
  0x41   : > { %v2671_v36 = vld [vmem:[%s3009_s13 + $0x94] ss:$8 sps:$4 sm:$0xff]   ;;  %v2673_v37 = vld [vmem:[%s3009_s13 + $0x90] ss:$8 sps:$4 sm:$0xff]   ;;  %v2674_v38 = vld [vmem:[%s3009_s13 + $0xa4] ss:$8 sps:$4 sm:$0xff]  }
  0x42   : > { %2418 = vmatpush3.bf16.msra.mxu0 %v2635_v7  ;;  %v2676_v39 = vld [vmem:[%s3009_s13 + $0xa0] ss:$8 sps:$4 sm:$0xff]   ;;  %v2677_v40 = vld [vmem:[%s3009_s13 + $0xb4] ss:$8 sps:$4 sm:$0xff]   ;;  %v2679_v43 = vld [vmem:[%s3009_s13 + $0xb0] ss:$8 sps:$4 sm:$0xff]  }
  0x43   : > { %2419 = vmatprep.subr.bf16.mxu0 %v2636_v8  ;;  %v2697_v41 = vld [vmem:[#allocation2 + $0x24] ss:$16 sps:$4 sm:$0xff]   ;;  %v2695_v42 = vld [vmem:[#allocation2 + $0x20] ss:$16 sps:$4 sm:$0xff]   ;;  %s313_s12 = scalar_lea.vmem [#allocation5], %s2273_s19  ;;  %p3586_p9 = scmp.ne.s32.totalorder %s3579_s15, 0 }
  0x44   : > { %2568 = vmatprep.subr.bf16.mxu1 %v2697_v41  ;;  %v2680_v44 = vld [vmem:[%s3009_s13 + $0xc4] ss:$8 sps:$4 sm:$0xff]   ;;  %v2698_v46 = vld [vmem:[#allocation2 + $0x40] ss:$16 sps:$4 sm:$0xff]   ;;  %v2683_v50 = vld [vmem:[%s3009_s13 + $0xd4] ss:$8 sps:$4 sm:$0xff]  }
  0x45   : > { %2572 = vmatpush1.bf16.msra.mxu1 %v2695_v42  ;;  %v2700_v45 = vld [vmem:[#allocation2 + $0x44] ss:$16 sps:$4 sm:$0xff]   ;;  %v2701_v48 = vld [vmem:[#allocation2 + $0x60] ss:$16 sps:$4 sm:$0xff]   ;;  %s2196_s18 = sshll.u32 %s313_s12, 4  ;;  %s2848_s9 = smov [#allocation5]   ;;  %s3527_s18 = int_to_ptr.vmem [resolvable:$true] %s2196_s18 }
  0x46   : > { %2420 = vmatpush3.bf16.msra.mxu0 %v2637_v9  ;;  %2569 = vmatprep.subr.bf16.mxu1 %v2700_v45  ;;  %v2703_v47 = vld [vmem:[#allocation2 + $0x64] ss:$16 sps:$4 sm:$0xff]   ;;  %v2682_v49 = vld [vmem:[%s3009_s13 + $0xc0] ss:$8 sps:$4 sm:$0xff]   ;;  %v2685_v52 = vld [vmem:[%s3009_s13 + $0xd0] ss:$8 sps:$4 sm:$0xff]  }
  0x47   : > { %2421 = vmatprep.subr.bf16.mxu0 %v2638_v10  ;;  %v2686_v53 = vld [vmem:[%s3009_s13 + $0xe4] ss:$8 sps:$4 sm:$0xff]   ;;  %v2688_v54 = vld [vmem:[%s3009_s13 + $0xe0] ss:$8 sps:$4 sm:$0xff]   ;;  %v2689_v55 = vld [vmem:[%s3009_s13 + $0xf4] ss:$8 sps:$4 sm:$0xff]  }
  0x48   : > { %v2691_v56 = vld [vmem:[%s3009_s13 + $0xf0] ss:$8 sps:$4 sm:$0xff]   ;;  %s2183_s13 = scalar_lea.sflag [#allocation4], %s311_s24  ;;  %s2776_s20 = scalar_lea.vmem %s3527_s18, 32 }
  0x49   : > { %2573 = vmatpush1.bf16.msra.mxu1 %v2698_v46  ;;  %p2777_p6 = scmp.ne.s32.totalorder %s3527_s18, %s2776_s20  ;;  %s2780_s25 = sshll.u32 %s2848_s9, 4  ;;  %s2781_s25 = int_to_ptr.vmem [resolvable:$false] %s2780_s25 }
  0x4a   : > { %2422 = vmatpush3.bf16.msra.mxu0 %v2639_v12  ;;  %2570 = vmatprep.subr.bf16.mxu1 %v2703_v47  ;;  %s2782_s19 = scalar_lea.vmem %s2781_s25, 64  ;;  %p2783_p2 = scmp.lt.s32.totalorder %s3527_s18, %s2781_s25 }
  0x4b   : > { %2423 = vmatprep.subr.bf16.mxu0 %v2640_v13  ;;  %p2778_p10 = pnand %p2777_p6, %p3586_p9  ;;  %p2784_p3 = scmp.lt.s32.totalorder %s2782_s19, %s2776_s20 }
  0x4d   : > { %2574 = vmatpush1.bf16.msra.mxu1 %v2701_v48  ;;  %p2779_p12 = pneg %p2778_p10  ;;  %p2785_p4 = por %p2784_p3, %p2783_p2 }
  0x4e   : > { %2424 = vmatpush3.bf16.msra.mxu0 %v2641_v14  ;;  %1216 = vmatprep.subr.bf16.mxu1 %v2706_v57 }
  0x4f   : > { %2425 = vmatprep.subr.bf16.mxu0 %v2642_v15  ;;  %p2786_p7 = pnand %p2785_p4, %p2779_p12 }
  0x52   : > { %2426 = vmatpush3.bf16.msra.mxu0 %v2643_v16 }
  0x53   : > { %1023 = vmatprep.subr.bf16.mxu0 %v2694_v22 }
  0x55   : > { %680 = vmatmul.mubr.bf16.vlgmr.msra.gmra.mrb[0].mxu0 %v2644_v17 }
  0x56   : > { %687 = vmatprep.mubr.bf16.mxu0 %v2647_v18  ;;  %1024 = vmatpush1.bf16.msra.mxu0 %v2692_v21 }
  0x57   : > { %1025 = vmatprep.subr.bf16.mxu0 %v2697_v41 }
  0x5a   : > { %1026 = vmatpush1.bf16.msra.mxu0 %v2695_v42 }
  0x5b   : > { %1027 = vmatprep.subr.bf16.mxu0 %v2700_v45 }
  0x5d   : > { %688 = vmatmul.mubr.bf16.gmra.mrb[4].mxu0 %v2649_v19 }
  0x5e   : > { %695 = vmatprep.mubr.bf16.mxu0 %v2650_v20  ;;  %1028 = vmatpush1.bf16.msra.mxu0 %v2698_v46 }
  0x5f   : > { %1029 = vmatprep.subr.bf16.mxu0 %v2703_v47 }
  0x62   : > { %1030 = vmatpush1.bf16.msra.mxu0 %v2701_v48 }
  0x65   : > { %696 = vmatmul.mubr.bf16.gmra.mrb[8].mxu0 %v2652_v23 }
  0x66   : > { %703 = vmatprep.mubr.bf16.mxu0 %v2653_v24 }
  0x6d   : > { %704 = vmatmul.mubr.bf16.gmra.mrb[12].mxu0 %v2655_v25 }
  0x6e   : > { %711 = vmatprep.mubr.bf16.mxu0 %v2656_v26 }
  0x75   : > { %712 = vmatmul.mubr.bf16.gmra.mrb[16].mxu0 %v2658_v27 }
  0x76   : > { %719 = vmatprep.mubr.bf16.mxu0 %v2659_v28 }
  0x7d   : > { %720 = vmatmul.mubr.bf16.gmra.mrb[20].mxu0 %v2661_v29 }
  0x7e   : > { %727 = vmatprep.mubr.bf16.mxu0 %v2662_v30 }
  0x85   : > { %728 = vmatmul.mubr.bf16.gmra.mrb[24].mxu0 %v2664_v31 }
  0x86   : > { %735 = vmatprep.mubr.bf16.mxu0 %v2665_v32 }
  0x8d   : > { %736 = vmatmul.mubr.bf16.gmra.mrb[28].mxu0 %v2667_v33 }
  0x8e   : > { %743 = vmatprep.mubr.bf16.mxu0 %v2668_v34 }
  0x95   : > { %744 = vmatmul.mubr.bf16.gmra.mrb[32].mxu0 %v2670_v35 }
  0x96   : > { %751 = vmatprep.mubr.bf16.mxu0 %v2671_v36 }
  0x9d   : > { %752 = vmatmul.mubr.bf16.gmra.mrb[36].mxu0 %v2673_v37 }
  0x9e   : > { %759 = vmatprep.mubr.bf16.mxu0 %v2674_v38 }
  0xa5   : > { %760 = vmatmul.mubr.bf16.gmra.mrb[40].mxu0 %v2676_v39 }
  0xa6   : > { %767 = vmatprep.mubr.bf16.mxu0 %v2677_v40 }
  0xad   : > { %768 = vmatmul.mubr.bf16.gmra.mrb[44].mxu0 %v2679_v43 }
  0xae   : > { %775 = vmatprep.mubr.bf16.mxu0 %v2680_v44 }
  0xb5   : > { %776 = vmatmul.mubr.bf16.gmra.mrb[48].mxu0 %v2682_v49 }
  0xb6   : > { %783 = vmatprep.mubr.bf16.mxu0 %v2683_v50 }
  0xbd   : > { %784 = vmatmul.mubr.bf16.gmra.mrb[52].mxu0 %v2685_v52  ;;  %v2704_v52 = vld [vmem:[#allocation2 + $0x8] ss:$16 sps:$4 sm:$0xff]  }
  0xbe   : > { %791 = vmatprep.mubr.bf16.mxu0 %v2686_v53 }
  0xc5   : > { %792 = vmatmul.mubr.bf16.gmra.mrb[56].mxu0 %v2688_v54 }
  0xc6   : > { %799 = vmatprep.mubr.bf16.mxu0 %v2689_v55 }
  0xcd   : > { %800 = vmatmul.mubr.bf16.gmra.mrb[60].mxu0 %v2691_v56  ;;  %v2709_v56 = vld [vmem:[#allocation2 + $0x2c] ss:$16 sps:$4 sm:$0xff]  }
  0xce   : > { %1055 = vmatprep.mubr.bf16.mxu0 %v2847_v51 }
 0x128   : > { %v2427_v58 = vpop.f32.mrb[0].mxu0 }
 0x129   : > { %v2428_v60 = vpop.f32.mrb[1].mxu0 }
 0x12a   : > { %v2429_v61 = vadd.f32 %v2428_v60, %v2427_v58  ;;  %v2430_v62 = vpop.f32.mrb[2].mxu0 }
 0x12b   : > { %v2431_v63 = vpop.f32.mrb[3].mxu0 }
 0x12c   : > { %v682_v0 = vadd.f32 %v2429_v61, %v3069_v59  ;;  %v2432_v1 = vadd.f32 %v2431_v63, %v2430_v62  ;;  %v2707_v61 = vld [vmem:[#allocation2 + $0x28] ss:$16 sps:$4 sm:$0xff]   ;;  %v2712_v63 = vld [vmem:[#allocation2 + $0x4c] ss:$16 sps:$4 sm:$0xff]  }
 0x12e   : > { %v685_v2 = vadd.f32 %v2432_v1, %v3069_v59  ;;  %v808_v3 = vmax.f32 %v682_v0, 0.0 }
 0x130   : > { %v809_v4 = vmax.f32 %v685_v2, 0.0  ;;  %v2433_v5 = vpop.f32.mrb[4].mxu0 }
 0x131   : > { %v2434_v6 = vpop.f32.mrb[5].mxu0 }
 0x132   : > { %v3073_v7 = vpack.c.bf16 %v809_v4, %v808_v3  ;;  %v2435_v8 = vadd.f32 %v2434_v6, %v2433_v5  ;;  %v2436_v9 = vpop.f32.mrb[6].mxu0  ;;  %v2710_v4 = vld [vmem:[#allocation2 + $0x48] ss:$16 sps:$4 sm:$0xff]  }
 0x133   : > { %v2437_v10 = vpop.f32.mrb[7].mxu0 }
 0x134   : > { %v690_v11 = vadd.f32 %v2435_v8, %v3069_v59  ;;  %v2438_v12 = vadd.f32 %v2437_v10, %v2436_v9  ;;  %2341 = vmatmul.mubr.msk.bf16.vlgmr.msra.gmra.mrb[64].mxu0 %vm974_vm0, %v3073_v7  ;;  %v2715_v9 = vld [vmem:[#allocation2 + $0x6c] ss:$16 sps:$4 sm:$0xff]  }
 0x135   : > { %1065 = vmatprep.mubr.bf16.mxu0 %v2847_v51 }
 0x136   : > { %v693_v13 = vadd.f32 %v2438_v12, %v3069_v59  ;;  %v810_v14 = vmax.f32 %v690_v11, 0.0 }
 0x138   : > { %v811_v15 = vmax.f32 %v693_v13, 0.0  ;;  %v2439_v16 = vpop.f32.mrb[8].mxu0  ;;  %v2713_v13 = vld [vmem:[#allocation2 + $0x68] ss:$16 sps:$4 sm:$0xff]  }
 0x139   : > { %v2440_v17 = vpop.f32.mrb[9].mxu0 }
 0x13a   : > { %v3080_v18 = vpack.c.bf16 %v811_v15, %v810_v14  ;;  %v2441_v19 = vadd.f32 %v2440_v17, %v2439_v16  ;;  %v2442_v20 = vpop.f32.mrb[10].mxu0 }
 0x13b   : > { %v2443_v21 = vpop.f32.mrb[11].mxu0 }
 0x13c   : > { %v698_v22 = vadd.f32 %v2441_v19, %v3069_v59  ;;  %v2444_v23 = vadd.f32 %v2443_v21, %v2442_v20  ;;  %2342 = vmatmul.mubr.msk.bf16.gmra.mrb[68].mxu0 %vm974_vm0, %v3080_v18 }
 0x13d   : > { %1075 = vmatprep.mubr.bf16.mxu0 %v2847_v51 }
 0x13e   : > { %v701_v24 = vadd.f32 %v2444_v23, %v3069_v59  ;;  %v812_v25 = vmax.f32 %v698_v22, 0.0 }
 0x140   : > { %v813_v26 = vmax.f32 %v701_v24, 0.0  ;;  %v2445_v27 = vpop.f32.mrb[12].mxu0 }
 0x141   : > { %v2446_v28 = vpop.f32.mrb[13].mxu0 }
 0x142   : > { %v3087_v29 = vpack.c.bf16 %v813_v26, %v812_v25  ;;  %v2447_v30 = vadd.f32 %v2446_v28, %v2445_v27  ;;  %v2448_v31 = vpop.f32.mrb[14].mxu0 }
 0x143   : > { %v2449_v32 = vpop.f32.mrb[15].mxu0 }
 0x144   : > { %v706_v33 = vadd.f32 %v2447_v30, %v3069_v59  ;;  %v2450_v34 = vadd.f32 %v2449_v32, %v2448_v31  ;;  %2343 = vmatmul.mubr.msk.bf16.gmra.mrb[72].mxu0 %vm974_vm0, %v3087_v29 }
 0x145   : > { %1085 = vmatprep.mubr.bf16.mxu0 %v2847_v51 }
 0x146   : > { %v709_v35 = vadd.f32 %v2450_v34, %v3069_v59  ;;  %v814_v36 = vmax.f32 %v706_v33, 0.0 }
 0x148   : > { %v815_v37 = vmax.f32 %v709_v35, 0.0  ;;  %v2451_v38 = vpop.f32.mrb[16].mxu0 }
 0x149   : > { %v2452_v39 = vpop.f32.mrb[17].mxu0 }
 0x14a   : > { %v3094_v40 = vpack.c.bf16 %v815_v37, %v814_v36  ;;  %v2453_v41 = vadd.f32 %v2452_v39, %v2451_v38  ;;  %v2454_v42 = vpop.f32.mrb[18].mxu0 }
 0x14b   : > { %v2455_v43 = vpop.f32.mrb[19].mxu0 }
 0x14c   : > { %v714_v44 = vadd.f32 %v2453_v41, %v3069_v59  ;;  %v2456_v45 = vadd.f32 %v2455_v43, %v2454_v42  ;;  %2344 = vmatmul.mubr.msk.bf16.gmra.mrb[76].mxu0 %vm974_vm0, %v3094_v40 }
 0x14e   : > { %v717_v46 = vadd.f32 %v2456_v45, %v3069_v59  ;;  %v816_v47 = vmax.f32 %v714_v44, 0.0 }
 0x150   : > { %v817_v48 = vmax.f32 %v717_v46, 0.0  ;;  %v2457_v49 = vpop.f32.mrb[20].mxu0 }
 0x151   : > { %v2458_v50 = vpop.f32.mrb[21].mxu0 }
 0x152   : > { %v3100_v53 = vpack.c.bf16 %v817_v48, %v816_v47  ;;  %v2459_v54 = vadd.f32 %v2458_v50, %v2457_v49  ;;  %v2460_v55 = vpop.f32.mrb[22].mxu0 }
 0x153   : > { %v2461_v57 = vpop.f32.mrb[23].mxu0 }
 0x154   : > { %v722_v58 = vadd.f32 %v2459_v54, %v3069_v59  ;;  %v2462_v60 = vadd.f32 %v2461_v57, %v2460_v55  ;;  %2345 = vmatmul.mubr.msk.bf16.vlgmr.msra.gmra.mrb[0].mxu1 %vm974_vm0, %v3100_v53 }
 0x155   : > { %1217 = vmatpush1.bf16.msra.mxu1 %v2704_v52  ;;  %1105 = vmatprep.mubr.bf16.mxu1 %v2847_v51 }
 0x156   : > { %v725_v62 = vadd.f32 %v2462_v60, %v3069_v59  ;;  %1218 = vmatprep.subr.bf16.mxu1 %v2709_v56  ;;  %v818_v0 = vmax.f32 %v722_v58, 0.0 }
 0x158   : > { %v819_v1 = vmax.f32 %v725_v62, 0.0  ;;  %v2463_v2 = vpop.f32.mrb[24].mxu0 }
 0x159   : > { %v2464_v3 = vpop.f32.mrb[25].mxu0  ;;  %1219 = vmatpush1.bf16.msra.mxu1 %v2707_v61 }
 0x15a   : > { %v3107_v5 = vpack.c.bf16 %v819_v1, %v818_v0  ;;  %v2465_v6 = vadd.f32 %v2464_v3, %v2463_v2  ;;  %v2466_v8 = vpop.f32.mrb[26].mxu0  ;;  %1220 = vmatprep.subr.bf16.mxu1 %v2712_v63 }
 0x15b   : > { %v2467_v10 = vpop.f32.mrb[27].mxu0 }
 0x15c   : > { %v730_v11 = vadd.f32 %v2465_v6, %v3069_v59  ;;  %v2468_v12 = vadd.f32 %v2467_v10, %v2466_v8  ;;  %2346 = vmatmul.mubr.msk.bf16.gmra.mrb[4].mxu1 %vm974_vm0, %v3107_v5 }
 0x15d   : > { %1115 = vmatprep.mubr.bf16.mxu1 %v2847_v51  ;;  %1221 = vmatpush1.bf16.msra.mxu1 %v2710_v4 }
 0x15e   : > { %v733_v14 = vadd.f32 %v2468_v12, %v3069_v59  ;;  %1222 = vmatprep.subr.bf16.mxu1 %v2715_v9  ;;  %v820_v15 = vmax.f32 %v730_v11, 0.0 }
 0x160   : > { %v821_v16 = vmax.f32 %v733_v14, 0.0  ;;  %v2469_v17 = vpop.f32.mrb[28].mxu0 }
 0x161   : > { %v2470_v19 = vpop.f32.mrb[29].mxu0  ;;  %1223 = vmatpush1.bf16.msra.mxu1 %v2713_v13 }
 0x162   : > { %v3114_v20 = vpack.c.bf16 %v821_v16, %v820_v15  ;;  %v2471_v21 = vadd.f32 %v2470_v19, %v2469_v17  ;;  %v2472_v22 = vpop.f32.mrb[30].mxu0 }
 0x163   : > { %v2473_v23 = vpop.f32.mrb[31].mxu0 }
 0x164   : > { %v738_v24 = vadd.f32 %v2471_v21, %v3069_v59  ;;  %v2474_v25 = vadd.f32 %v2473_v23, %v2472_v22  ;;  %2347 = vmatmul.mubr.msk.bf16.gmra.mrb[8].mxu1 %vm974_vm0, %v3114_v20 }
 0x165   : > { %1125 = vmatprep.mubr.bf16.mxu1 %v2847_v51 }
 0x166   : > { %v741_v26 = vadd.f32 %v2474_v25, %v3069_v59  ;;  %v822_v27 = vmax.f32 %v738_v24, 0.0 }
 0x168   : > { %v823_v28 = vmax.f32 %v741_v26, 0.0  ;;  %v2475_v30 = vpop.f32.mrb[32].mxu0 }
 0x169   : > { %v2476_v31 = vpop.f32.mrb[33].mxu0 }
 0x16a   : > { %v3121_v32 = vpack.c.bf16 %v823_v28, %v822_v27  ;;  %v2477_v33 = vadd.f32 %v2476_v31, %v2475_v30  ;;  %v2478_v34 = vpop.f32.mrb[34].mxu0 }
 0x16b   : > { %v2479_v35 = vpop.f32.mrb[35].mxu0 }
 0x16c   : > { %v746_v36 = vadd.f32 %v2477_v33, %v3069_v59  ;;  %v2480_v37 = vadd.f32 %v2479_v35, %v2478_v34  ;;  %2348 = vmatmul.mubr.msk.bf16.gmra.mrb[12].mxu1 %vm974_vm0, %v3121_v32 }
 0x16d   : > { %1135 = vmatprep.mubr.bf16.mxu1 %v2847_v51 }
 0x16e   : > { %v749_v38 = vadd.f32 %v2480_v37, %v3069_v59  ;;  %v824_v39 = vmax.f32 %v746_v36, 0.0 }
 0x170   : > { %v825_v41 = vmax.f32 %v749_v38, 0.0  ;;  %v2481_v42 = vpop.f32.mrb[36].mxu0 }
 0x171   : > { %v2482_v43 = vpop.f32.mrb[37].mxu0 }
 0x172   : > { %v3128_v44 = vpack.c.bf16 %v825_v41, %v824_v39  ;;  %v2483_v45 = vadd.f32 %v2482_v43, %v2481_v42  ;;  %v2484_v46 = vpop.f32.mrb[38].mxu0 }
 0x173   : > { %v2485_v47 = vpop.f32.mrb[39].mxu0 }
 0x174   : > { %v754_v48 = vadd.f32 %v2483_v45, %v3069_v59  ;;  %v2486_v49 = vadd.f32 %v2485_v47, %v2484_v46  ;;  %2349 = vmatmul.mubr.msk.bf16.gmra.mrb[16].mxu1 %vm974_vm0, %v3128_v44 }
 0x175   : > { %1145 = vmatprep.mubr.bf16.mxu1 %v2847_v51 }
 0x176   : > { %v757_v50 = vadd.f32 %v2486_v49, %v3069_v59  ;;  %v826_v52 = vmax.f32 %v754_v48, 0.0 }
 0x178   : > { %v827_v54 = vmax.f32 %v757_v50, 0.0  ;;  %v2487_v55 = vpop.f32.mrb[40].mxu0 }
 0x179   : > { %v2488_v56 = vpop.f32.mrb[41].mxu0 }
 0x17a   : > { %v3135_v57 = vpack.c.bf16 %v827_v54, %v826_v52  ;;  %v2489_v58 = vadd.f32 %v2488_v56, %v2487_v55  ;;  %v2490_v60 = vpop.f32.mrb[42].mxu0 }
 0x17b   : > { %v2491_v61 = vpop.f32.mrb[43].mxu0 }
 0x17c   : > { %v762_v62 = vadd.f32 %v2489_v58, %v3069_v59  ;;  %v2492_v63 = vadd.f32 %v2491_v61, %v2490_v60  ;;  %2350 = vmatmul.mubr.msk.bf16.gmra.mrb[20].mxu1 %vm974_vm0, %v3135_v57 }
 0x17d   : > { %1155 = vmatprep.mubr.bf16.mxu1 %v2847_v51 }
 0x17e   : > { %v765_v0 = vadd.f32 %v2492_v63, %v3069_v59  ;;  %v828_v1 = vmax.f32 %v762_v62, 0.0 }
 0x180   : > { %v829_v2 = vmax.f32 %v765_v0, 0.0  ;;  %v2493_v3 = vpop.f32.mrb[44].mxu0 }
 0x181   : > { %v2494_v4 = vpop.f32.mrb[45].mxu0 }
 0x182   : > { %v3142_v6 = vpack.c.bf16 %v829_v2, %v828_v1  ;;  %v2495_v8 = vadd.f32 %v2494_v4, %v2493_v3  ;;  %v2496_v9 = vpop.f32.mrb[46].mxu0 }
 0x183   : > { %v2497_v10 = vpop.f32.mrb[47].mxu0 }
 0x184   : > { %v770_v11 = vadd.f32 %v2495_v8, %v3069_v59  ;;  %v2498_v12 = vadd.f32 %v2497_v10, %v2496_v9  ;;  %2351 = vmatmul.mubr.msk.bf16.gmra.mrb[24].mxu1 %vm974_vm0, %v3142_v6  ;;  %v2720_v10 = vld [vmem:[%s3572_s5 + $0x50] sm:$0xff]  }
 0x185   : > { %1165 = vmatprep.mubr.bf16.mxu1 %v2847_v51 }
 0x186   : > { %v773_v13 = vadd.f32 %v2498_v12, %v3069_v59  ;;  %v830_v14 = vmax.f32 %v770_v11, 0.0  ;;  %v2721_v11 = vld [vmem:[%s3572_s5 + $0x10] sm:$0xff]  }
 0x188   : > { %v831_v15 = vmax.f32 %v773_v13, 0.0  ;;  %v2499_v16 = vpop.f32.mrb[48].mxu0 }
 0x189   : > { %v2500_v17 = vpop.f32.mrb[49].mxu0 }
 0x18a   : > { %v3149_v19 = vpack.c.bf16 %v831_v15, %v830_v14  ;;  %v2501_v21 = vadd.f32 %v2500_v17, %v2499_v16  ;;  %v2502_v22 = vpop.f32.mrb[50].mxu0  ;;  %v2722_v16 = vld [vmem:[%s3572_s5 + $0x58] sm:$0xff]  }
 0x18b   : > { %v2503_v23 = vpop.f32.mrb[51].mxu0 }
 0x18c   : > { %v778_v24 = vadd.f32 %v2501_v21, %v3069_v59  ;;  %v2504_v25 = vadd.f32 %v2503_v23, %v2502_v22  ;;  %2352 = vmatmul.mubr.msk.bf16.gmra.mrb[28].mxu1 %vm974_vm0, %v3149_v19  ;;  %v2723_v22 = vld [vmem:[%s3572_s5 + $0x18] sm:$0xff]  }
 0x18d   : > { %1175 = vmatprep.mubr.bf16.mxu1 %v2847_v51 }
 0x18e   : > { %v781_v26 = vadd.f32 %v2504_v25, %v3069_v59  ;;  %v832_v27 = vmax.f32 %v778_v24, 0.0 }
 0x190   : > { %v833_v28 = vmax.f32 %v781_v26, 0.0  ;;  %v2505_v30 = vpop.f32.mrb[52].mxu0 }
 0x191   : > { %v2506_v31 = vpop.f32.mrb[53].mxu0 }
 0x192   : > { %v3156_v33 = vpack.c.bf16 %v833_v28, %v832_v27  ;;  %v2507_v34 = vadd.f32 %v2506_v31, %v2505_v30  ;;  %v2508_v35 = vpop.f32.mrb[54].mxu0  ;;  %v2724_v28 = vld [vmem:[%s3572_s5 + $0x60] sm:$0xff]  }
 0x193   : > { %v2509_v36 = vpop.f32.mrb[55].mxu0  ;;  %v2725_v31 = vld [vmem:[%s3572_s5 + $0x20] sm:$0xff]  }
 0x194   : > { %v786_v37 = vadd.f32 %v2507_v34, %v3069_v59  ;;  %v2510_v38 = vadd.f32 %v2509_v36, %v2508_v35  ;;  %2353 = vmatmul.mubr.msk.bf16.gmra.mrb[32].mxu1 %vm974_vm0, %v3156_v33 }
 0x195   : > { %1185 = vmatprep.mubr.bf16.mxu1 %v2847_v51 }
 0x196   : > { %v789_v39 = vadd.f32 %v2510_v38, %v3069_v59  ;;  %v834_v41 = vmax.f32 %v786_v37, 0.0 }
 0x198   : > { %v835_v42 = vmax.f32 %v789_v39, 0.0  ;;  %v2511_v43 = vpop.f32.mrb[56].mxu0  ;;  %v2726_v39 = vld [vmem:[%s3572_s5 + $0x68] sm:$0xff]  }
 0x199   : > { %v2512_v45 = vpop.f32.mrb[57].mxu0 }
 0x19a   : > { %v3163_v46 = vpack.c.bf16 %v835_v42, %v834_v41  ;;  %v2513_v47 = vadd.f32 %v2512_v45, %v2511_v43  ;;  %v2514_v48 = vpop.f32.mrb[58].mxu0  ;;  %v2727_v45 = vld [vmem:[%s3572_s5 + $0x28] sm:$0xff]  }
 0x19b   : > { %v2515_v49 = vpop.f32.mrb[59].mxu0 }
 0x19c   : > { %v794_v50 = vadd.f32 %v2513_v47, %v3069_v59  ;;  %v2516_v52 = vadd.f32 %v2515_v49, %v2514_v48  ;;  %2354 = vmatmul.mubr.msk.bf16.gmra.mrb[36].mxu1 %vm974_vm0, %v3163_v46 }
 0x19d   : > { %1195 = vmatprep.mubr.bf16.mxu1 %v2847_v51 }
 0x19e   : > { %v797_v54 = vadd.f32 %v2516_v52, %v3069_v59  ;;  %v836_v55 = vmax.f32 %v794_v50, 0.0 }
 0x1a0   : > { %v837_v56 = vmax.f32 %v797_v54, 0.0  ;;  %v2517_v58 = vpop.f32.mrb[60].mxu0 }
 0x1a1   : > { %v2518_v60 = vpop.f32.mrb[61].mxu0 }
 0x1a2   : > { %v3170_v61 = vpack.c.bf16 %v837_v56, %v836_v55  ;;  %v2519_v62 = vadd.f32 %v2518_v60, %v2517_v58  ;;  %v2520_v63 = vpop.f32.mrb[62].mxu0  ;;  %v2728_v55 = vld [vmem:[%s3572_s5 + $0x70] sm:$0xff]  }
 0x1a3   : > { %v2521_v0 = vpop.f32.mrb[63].mxu0  ;;  %v2729_v58 = vld [vmem:[%s3572_s5 + $0x30] sm:$0xff]  }
 0x1a4   : > { %v802_v1 = vadd.f32 %v2519_v62, %v3069_v59  ;;  %v2522_v2 = vadd.f32 %v2521_v0, %v2520_v63  ;;  %2355 = vmatmul.mubr.msk.bf16.gmra.mrb[40].mxu1 %vm974_vm0, %v3170_v61 }
 0x1a5   : > { %1205 = vmatprep.mubr.bf16.mxu1 %v2847_v51 }
 0x1a6   : > { %v805_v3 = vadd.f32 %v2522_v2, %v3069_v59  ;;  %v838_v4 = vmax.f32 %v802_v1, 0.0  ;;  %v874_v59 = vlaneseq  ;;  %v2730_v2 = vld [vmem:[%s3572_s5 + $0x78] sm:$0xff]  }
 0x1a8   : > { %v839_v8 = vmax.f32 %v805_v3, 0.0 }
 0x1aa   : > { %v3177_v9 = vpack.c.bf16 %v839_v8, %v838_v4 }
 0x1ac   : > { %2356 = vmatmul.mubr.msk.bf16.gmra.mrb[44].mxu1 %vm974_vm0, %v3177_v9 }
 0x1ad   : > { %1248 = vmatprep.mubr.bf16.mxu1 %v2847_v51 }
 0x1b4   : > { %2357 = vmatmul.mubr.msk.bf16.vlgmr.msra.gmra.mrb[48].mxu1 %vm974_vm0, %v3073_v7  ;;  %v3211_v7 = vshrl.u32 %v874_v59, 7  ;;  %v2731_v59 = vld [vmem:[%s3572_s5 + $0x38] sm:$0xff]  }
 0x1b5   : > { %1258 = vmatprep.mubr.bf16.mxu1 %v2847_v51 }
 0x1bc   : > { %2358 = vmatmul.mubr.msk.bf16.gmra.mrb[52].mxu1 %vm974_vm0, %v3080_v18  ;;  %v2716_v18 = vld [vmem:[%s3572_s5 + $0x40] sm:$0xff]  }
 0x1bd   : > { %1268 = vmatprep.mubr.bf16.mxu1 %v2847_v51  ;;  %2523 = vmatprep.subr.bf16.mxu0 %v2716_v18 }
 0x1c4   : > { %2359 = vmatmul.mubr.msk.bf16.gmra.mrb[56].mxu1 %vm974_vm0, %v3087_v29  ;;  %v2717_v29 = vld [vmem:[%s3572_s5] sm:$0xff]  }
 0x1c5   : > { %1278 = vmatprep.mubr.bf16.mxu1 %v2847_v51  ;;  %2524 = vmatpush3.bf16.msra.mxu0 %v2717_v29 }
 0x1cc   : > { %2360 = vmatmul.mubr.msk.bf16.gmra.mrb[60].mxu1 %vm974_vm0, %v3094_v40  ;;  %v876_v40 = vsub.s32 0, %v3211_v7 }
 0x1cd   : > { %1288 = vmatprep.mubr.bf16.mxu1 %v2847_v51 }
 0x1d4   : > { %2361 = vmatmul.mubr.msk.bf16.gmra.mrb[64].mxu1 %vm974_vm0, %v3100_v53  ;;  %v3224_v53 = vld [vmem:[%s3571_s4] sm:$0xf] }
 0x1d5   : > { %1298 = vmatprep.mubr.bf16.mxu1 %v2847_v51 }
 0x1dc   : > { %2362 = vmatmul.mubr.msk.bf16.gmra.mrb[68].mxu1 %vm974_vm0, %v3107_v5  ;;  %v880_v5 = vsub.s32 1, %v3211_v7 }
 0x1dd   : > { %1308 = vmatprep.mubr.bf16.mxu1 %v2847_v51 }
 0x1e4   : > { %2363 = vmatmul.mubr.msk.bf16.gmra.mrb[72].mxu1 %vm974_vm0, %v3114_v20  ;;  %v2718_v20 = vld [vmem:[%s3572_s5 + $0x48] sm:$0xff]  }
 0x1e5   : > { %1318 = vmatprep.mubr.bf16.mxu1 %v2847_v51  ;;  %2525 = vmatprep.subr.bf16.mxu0 %v2718_v20 }
 0x1ec   : > { %2364 = vmatmul.mubr.msk.bf16.gmra.mrb[76].mxu1 %vm974_vm0, %v3121_v32  ;;  %v2719_v32 = vld [vmem:[%s3572_s5 + $0x8] sm:$0xff]  }
 0x1ed   : > { %1328 = vmatprep.mubr.bf16.mxu1 %v2847_v51  ;;  %2526 = vmatpush3.bf16.msra.mxu0 %v2719_v32 }
 0x1ee   : > { %2527 = vmatprep.subr.bf16.mxu0 %v2720_v10 }
 0x1f1   : > { %2528 = vmatpush3.bf16.msra.mxu0 %v2721_v11 }
 0x1f2   : > { %2529 = vmatprep.subr.bf16.mxu0 %v2722_v16 }
 0x1f4   : > { %2365 = vmatmul.mubr.msk.bf16.gmra.mrb[80].mxu1 %vm974_vm0, %v3128_v44  ;;  %v3236_v44 = vrot.slane %v3224_v53, %v876_v40 }
 0x1f5   : > { %1338 = vmatprep.mubr.bf16.mxu1 %v2847_v51  ;;  %2530 = vmatpush3.bf16.msra.mxu0 %v2723_v22 }
 0x1f6   : > { %2531 = vmatprep.subr.bf16.mxu0 %v2724_v28 }
 0x1f9   : > { %2532 = vmatpush3.bf16.msra.mxu0 %v2725_v31 }
 0x1fa   : > { %2533 = vmatprep.subr.bf16.mxu0 %v2726_v39 }
 0x1fc   : > { %2366 = vmatmul.mubr.msk.bf16.gmra.mrb[84].mxu1 %vm974_vm0, %v3135_v57  ;;  %v3239_v57 = vrot.slane %v3224_v53, %v880_v5 }
 0x1fd   : > { %1348 = vmatprep.mubr.bf16.mxu1 %v2847_v51  ;;  %2534 = vmatpush3.bf16.msra.mxu0 %v2727_v45 }
 0x1fe   : > { %2535 = vmatprep.subr.bf16.mxu0 %v2728_v55 }
 0x201   : > { %2536 = vmatpush3.bf16.msra.mxu0 %v2729_v58 }
 0x202   : > { %2537 = vmatprep.subr.bf16.mxu0 %v2730_v2 }
 0x204   : > { %2367 = vmatmul.mubr.msk.bf16.gmra.mrb[88].mxu1 %vm974_vm0, %v3142_v6 }
 0x205   : > { %1358 = vmatprep.mubr.bf16.mxu1 %v2847_v51  ;;  %2538 = vmatpush3.bf16.msra.mxu0 %v2731_v59 }
 0x207   : > { %v1057_v12 = vpop.f32.mrb[64].mxu0 }
 0x208   : > { %v1058_v6 = vadd.f32 %v1057_v12, %v3236_v44  ;;  %v1059_v13 = vpop.f32.mrb[65].mxu0 }
 0x209   : > { %v1060_v14 = vadd.f32 %v1059_v13, %v3239_v57  ;;  %v1061_v15 = vpop.f32.mrb[66].mxu0 }
 0x20a   : > { %v1062_v17 = vadd.f32 %v1061_v15, %v3236_v44  ;;  %v1063_v21 = vpop.f32.mrb[67].mxu0  ;;  %v1409_v24 = vmax.f32 %v1058_v6, 0.0 }
 0x20b   : > { %v1064_v23 = vadd.f32 %v1063_v21, %v3239_v57  ;;  %v1410_v26 = vmax.f32 %v1060_v14, 0.0 }
 0x20c   : > { %v1413_v25 = vmax.f32 %v1062_v17, 0.0  ;;  %2368 = vmatmul.mubr.msk.bf16.gmra.mrb[92].mxu1 %vm974_vm0, %v3149_v19 }
 0x20d   : > { %v1414_v27 = vmax.f32 %v1064_v23, 0.0  ;;  %1368 = vmatprep.mubr.bf16.mxu1 %v2847_v51 }
 0x20e   : > { %v1537_v30 = vadd.f32 %v1413_v25, %v1409_v24 }
 0x20f   : > { %v1550_v34 = vadd.f32 %v1414_v27, %v1410_v26  ;;  %v1067_v35 = vpop.f32.mrb[68].mxu0 }
 0x210   : > { %v1068_v36 = vadd.f32 %v1067_v35, %v3236_v44  ;;  %v1069_v19 = vpop.f32.mrb[69].mxu0 }
 0x211   : > { %v1070_v37 = vadd.f32 %v1069_v19, %v3239_v57  ;;  %v1071_v38 = vpop.f32.mrb[70].mxu0 }
 0x212   : > { %v1417_v41 = vmax.f32 %v1068_v36, 0.0  ;;  %v1072_v42 = vadd.f32 %v1071_v38, %v3236_v44  ;;  %v1073_v43 = vpop.f32.mrb[71].mxu0 }
 0x213   : > { %v1418_v47 = vmax.f32 %v1070_v37, 0.0  ;;  %v1074_v48 = vadd.f32 %v1073_v43, %v3239_v57 }
 0x214   : > { %v1538_v49 = vadd.f32 %v1537_v30, %v1417_v41  ;;  %v1421_v50 = vmax.f32 %v1072_v42, 0.0  ;;  %2369 = vmatmul.mubr.msk.bf16.gmra.mrb[96].mxu1 %vm974_vm0, %v3156_v33 }
 0x215   : > { %v1551_v52 = vadd.f32 %v1550_v34, %v1418_v47  ;;  %v1422_v54 = vmax.f32 %v1074_v48, 0.0  ;;  %1378 = vmatprep.mubr.bf16.mxu1 %v2847_v51 }
 0x216   : > { %v1539_v56 = vadd.f32 %v1538_v49, %v1421_v50 }
 0x217   : > { %v1552_v60 = vadd.f32 %v1551_v52, %v1422_v54  ;;  %v1077_v62 = vpop.f32.mrb[72].mxu0 }
 0x218   : > { %v1078_v63 = vadd.f32 %v1077_v62, %v3236_v44  ;;  %v1079_v33 = vpop.f32.mrb[73].mxu0 }
 0x219   : > { %v1080_v0 = vadd.f32 %v1079_v33, %v3239_v57  ;;  %v1081_v1 = vpop.f32.mrb[74].mxu0 }
 0x21a   : > { %v1425_v3 = vmax.f32 %v1078_v63, 0.0  ;;  %v1082_v4 = vadd.f32 %v1081_v1, %v3236_v44  ;;  %v1083_v8 = vpop.f32.mrb[75].mxu0 }
 0x21b   : > { %v1426_v18 = vmax.f32 %v1080_v0, 0.0  ;;  %v1084_v29 = vadd.f32 %v1083_v8, %v3239_v57 }
 0x21c   : > { %v1540_v40 = vadd.f32 %v1539_v56, %v1425_v3  ;;  %v1429_v5 = vmax.f32 %v1082_v4, 0.0  ;;  %2370 = vmatmul.mubr.msk.bf16.gmra.mrb[100].mxu1 %vm974_vm0, %v3163_v46 }
 0x21d   : > { %v1553_v20 = vadd.f32 %v1552_v60, %v1426_v18  ;;  %v1430_v32 = vmax.f32 %v1084_v29, 0.0  ;;  %1388 = vmatprep.mubr.bf16.mxu1 %v2847_v51 }
 0x21e   : > { %v1541_v10 = vadd.f32 %v1540_v40, %v1429_v5 }
 0x21f   : > { %v1554_v11 = vadd.f32 %v1553_v20, %v1430_v32  ;;  %v1087_v12 = vpop.f32.mrb[76].mxu0 }
 0x220   : > { %v1088_v6 = vadd.f32 %v1087_v12, %v3236_v44  ;;  %v1089_v13 = vpop.f32.mrb[77].mxu0 }
 0x221   : > { %v1090_v14 = vadd.f32 %v1089_v13, %v3239_v57  ;;  %v1091_v15 = vpop.f32.mrb[78].mxu0 }
 0x222   : > { %v1433_v16 = vmax.f32 %v1088_v6, 0.0  ;;  %v1092_v17 = vadd.f32 %v1091_v15, %v3236_v44  ;;  %v1093_v21 = vpop.f32.mrb[79].mxu0 }
 0x223   : > { %v1434_v22 = vmax.f32 %v1090_v14, 0.0  ;;  %v1094_v46 = vadd.f32 %v1093_v21, %v3239_v57 }
 0x224   : > { %v1542_v23 = vadd.f32 %v1541_v10, %v1433_v16  ;;  %v1437_v24 = vmax.f32 %v1092_v17, 0.0  ;;  %2371 = vmatmul.mubr.msk.bf16.gmra.mrb[104].mxu1 %vm974_vm0, %v3170_v61 }
 0x225   : > { %v1555_v25 = vadd.f32 %v1554_v11, %v1434_v22  ;;  %v1438_v26 = vmax.f32 %v1094_v46, 0.0  ;;  %1398 = vmatprep.mubr.bf16.mxu1 %v2847_v51 }
 0x226   : > { %v1543_v27 = vadd.f32 %v1542_v23, %v1437_v24 }
 0x227   : > { %v1556_v28 = vadd.f32 %v1555_v25, %v1438_v26  ;;  %v1097_v30 = vpop.f32.mrb[0].mxu1 }
 0x228   : > { %v1098_v31 = vadd.f32 %v1097_v30, %v3236_v44  ;;  %v1099_v34 = vpop.f32.mrb[1].mxu1  ;;  %v1544_v2 = vrot.slane %v1543_v27, 4 }
 0x229   : > { %v1100_v35 = vadd.f32 %v1099_v34, %v3239_v57  ;;  %v1101_v36 = vpop.f32.mrb[2].mxu1  ;;  %v1557_v8 = vrot.slane %v1556_v28, 4 }
 0x22a   : > { %v1102_v19 = vadd.f32 %v1101_v36, %v3236_v44  ;;  %v1103_v37 = vpop.f32.mrb[3].mxu1  ;;  %v1441_v39 = vmax.f32 %v1098_v31, 0.0  ;;  %v1545_v10 = vadd.f32 %v1544_v2, %v1543_v27 }
 0x22b   : > { %v1104_v38 = vadd.f32 %v1103_v37, %v3239_v57  ;;  %v1442_v51 = vmax.f32 %v1100_v35, 0.0  ;;  %v1558_v6 = vadd.f32 %v1557_v8, %v1556_v28 }
 0x22c   : > { %v1445_v61 = vmax.f32 %v1102_v19, 0.0  ;;  %2372 = vmatmul.mubr.msk.bf16.gmra.mrb[108].mxu1 %vm974_vm0, %v3177_v9  ;;  %v1546_v21 = vrot.slane %v1545_v10, 2 }
 0x22d   : > { %v1446_v41 = vmax.f32 %v1104_v38, 0.0  ;;  %v1559_v23 = vrot.slane %v1558_v6, 2 }
 0x22e   : > { %v1589_v42 = vadd.f32 %v1445_v61, %v1441_v39  ;;  %v1547_v34 = vadd.f32 %v1546_v21, %v1545_v10 }
 0x22f   : > { %v1602_v43 = vadd.f32 %v1446_v41, %v1442_v51  ;;  %v1107_v45 = vpop.f32.mrb[4].mxu1  ;;  %v1560_v19 = vadd.f32 %v1559_v23, %v1558_v6 }
 0x230   : > { %v1108_v47 = vadd.f32 %v1107_v45, %v3236_v44  ;;  %v1109_v48 = vpop.f32.mrb[5].mxu1  ;;  %v1548_v41 = vrot.slane %v1547_v34, 1 }
 0x231   : > { %v1110_v49 = vadd.f32 %v1109_v48, %v3239_v57  ;;  %v1111_v50 = vpop.f32.mrb[6].mxu1 }
 0x232   : > { %v1449_v52 = vmax.f32 %v1108_v47, 0.0  ;;  %v1112_v54 = vadd.f32 %v1111_v50, %v3236_v44  ;;  %v1113_v55 = vpop.f32.mrb[7].mxu1  ;;  %v1561_v47 = vrot.slane %v1560_v19, 1 }
 0x233   : > { %v1450_v56 = vmax.f32 %v1110_v49, 0.0  ;;  %v1114_v58 = vadd.f32 %v1113_v55, %v3239_v57 }
 0x234   : > { %v1590_v60 = vadd.f32 %v1589_v42, %v1449_v52  ;;  %v1453_v9 = vmax.f32 %v1112_v54, 0.0 }
 0x235   : > { %v1603_v62 = vadd.f32 %v1602_v43, %v1450_v56  ;;  %v1454_v63 = vmax.f32 %v1114_v58, 0.0 }
 0x236   : > { %v1591_v33 = vadd.f32 %v1590_v60, %v1453_v9  ;;  %v1549_v60 = vadd.f32 %v1548_v41, %v1547_v34 }
 0x237   : > { %v1604_v0 = vadd.f32 %v1603_v62, %v1454_v63  ;;  %v1117_v1 = vpop.f32.mrb[8].mxu1 }
 0x238   : > { %v1118_v3 = vadd.f32 %v1117_v1, %v3236_v44  ;;  %v1119_v4 = vpop.f32.mrb[9].mxu1 }
 0x239   : > { %v1120_v59 = vadd.f32 %v1119_v4, %v3239_v57  ;;  %v1121_v18 = vpop.f32.mrb[10].mxu1 }
 0x23a   : > { %v1457_v29 = vmax.f32 %v1118_v3, 0.0  ;;  %v1122_v40 = vadd.f32 %v1121_v18, %v3236_v44  ;;  %v1123_v5 = vpop.f32.mrb[11].mxu1 }
 0x23b   : > { %v1458_v20 = vmax.f32 %v1120_v59, 0.0  ;;  %v1124_v32 = vadd.f32 %v1123_v5, %v3239_v57 }
 0x23c   : > { %v1592_v11 = vadd.f32 %v1591_v33, %v1457_v29  ;;  %v1461_v12 = vmax.f32 %v1122_v40, 0.0  ;;  %v1562_v33 = vadd.f32 %v1561_v47, %v1560_v19  ;;  %v1746_v29 = vmul.f32 0.015625, %v1549_v60 }
 0x23d   : > { %v1605_v13 = vadd.f32 %v1604_v0, %v1458_v20  ;;  %v1462_v14 = vmax.f32 %v1124_v32, 0.0 }
 0x23e   : > { %v1593_v15 = vadd.f32 %v1592_v11, %v1461_v12  ;;  %v1747_v32 = vmul.f32 0.015625, %v1562_v33 }
 0x23f   : > { %v1606_v16 = vadd.f32 %v1605_v13, %v1462_v14  ;;  %v1127_v17 = vpop.f32.mrb[12].mxu1 }
 0x240   : > { %v1128_v22 = vadd.f32 %v1127_v17, %v3236_v44  ;;  %v1129_v46 = vpop.f32.mrb[13].mxu1 }
 0x241   : > { %v1130_v24 = vadd.f32 %v1129_v46, %v3239_v57  ;;  %v1131_v25 = vpop.f32.mrb[14].mxu1 }
 0x242   : > { %v1465_v26 = vmax.f32 %v1128_v22, 0.0  ;;  %v1132_v30 = vadd.f32 %v1131_v25, %v3236_v44  ;;  %v1133_v27 = vpop.f32.mrb[15].mxu1  ;;  %v1762_v22 = vpack.c.bf16 %v1746_v29, %v1746_v29  ;;  %v1763_v25 = vpack.c.bf16 %v1747_v32, %v1747_v32 }
 0x243   : > { %v1466_v31 = vmax.f32 %v1130_v24, 0.0  ;;  %v1134_v28 = vadd.f32 %v1133_v27, %v3239_v57 }
 0x244   : > { %v1594_v35 = vadd.f32 %v1593_v15, %v1465_v26  ;;  %v1469_v36 = vmax.f32 %v1132_v30, 0.0  ;;  %v1865_v19 = vunpack.c.l.b16 %v1762_v22 }
 0x245   : > { %v1607_v37 = vadd.f32 %v1606_v16, %v1466_v31  ;;  %v1470_v38 = vmax.f32 %v1134_v28, 0.0 }
 0x246   : > { %v1595_v39 = vadd.f32 %v1594_v35, %v1469_v36 }
 0x247   : > { %v1608_v61 = vadd.f32 %v1607_v37, %v1470_v38  ;;  %v1137_v51 = vpop.f32.mrb[16].mxu1 }
 0x248   : > { %v1596_v42 = vrot.slane %v1595_v39, 4  ;;  %v1138_v43 = vadd.f32 %v1137_v51, %v3236_v44  ;;  %v1139_v45 = vpop.f32.mrb[17].mxu1 }
 0x249   : > { %v1609_v48 = vrot.slane %v1608_v61, 4  ;;  %v1140_v49 = vadd.f32 %v1139_v45, %v3239_v57  ;;  %v1141_v50 = vpop.f32.mrb[18].mxu1 }
 0x24a   : > { %v1597_v52 = vadd.f32 %v1596_v42, %v1595_v39  ;;  %v1142_v54 = vadd.f32 %v1141_v50, %v3236_v44  ;;  %v1143_v55 = vpop.f32.mrb[19].mxu1  ;;  %v1473_v62 = vmax.f32 %v1138_v43, 0.0 }
 0x24b   : > { %v1610_v56 = vadd.f32 %v1609_v48, %v1608_v61  ;;  %v1144_v58 = vadd.f32 %v1143_v55, %v3239_v57  ;;  %v1474_v1 = vmax.f32 %v1140_v49, 0.0  ;;  %v1866_v61 = vunpack.c.l.b16 %v1763_v25 }
 0x24c   : > { %v1598_v9 = vrot.slane %v1597_v52, 2  ;;  %v1477_v63 = vmax.f32 %v1142_v54, 0.0 }
 0x24d   : > { %v1611_v0 = vrot.slane %v1610_v56, 2  ;;  %v1478_v2 = vmax.f32 %v1144_v58, 0.0 }
 0x24e   : > { %v1599_v3 = vadd.f32 %v1598_v9, %v1597_v52  ;;  %v1641_v4 = vadd.f32 %v1477_v63, %v1473_v62 }
 0x24f   : > { %v1612_v8 = vadd.f32 %v1611_v0, %v1610_v56  ;;  %v1654_v59 = vadd.f32 %v1478_v2, %v1474_v1  ;;  %v1147_v18 = vpop.f32.mrb[20].mxu1 }
 0x250   : > { %v1600_v40 = vrot.slane %v1599_v3, 1  ;;  %v1148_v5 = vadd.f32 %v1147_v18, %v3236_v44  ;;  %v1149_v20 = vpop.f32.mrb[21].mxu1 }
 0x251   : > { %v1613_v10 = vrot.slane %v1612_v8, 1  ;;  %v1150_v11 = vadd.f32 %v1149_v20, %v3239_v57  ;;  %v1151_v12 = vpop.f32.mrb[22].mxu1 }
 0x252   : > { %v1601_v6 = vadd.f32 %v1600_v40, %v1599_v3  ;;  %v1481_v13 = vmax.f32 %v1148_v5, 0.0  ;;  %v1152_v14 = vadd.f32 %v1151_v12, %v3236_v44  ;;  %v1153_v15 = vpop.f32.mrb[23].mxu1 }
 0x253   : > { %v1614_v16 = vadd.f32 %v1613_v10, %v1612_v8  ;;  %v1482_v17 = vmax.f32 %v1150_v11, 0.0  ;;  %v1154_v21 = vadd.f32 %v1153_v15, %v3239_v57 }
 0x254   : > { %v1750_v46 = vmul.f32 0.015625, %v1601_v6  ;;  %v1642_v23 = vadd.f32 %v1641_v4, %v1481_v13  ;;  %v1485_v24 = vmax.f32 %v1152_v14, 0.0 }
 0x255   : > { %v1751_v26 = vmul.f32 0.015625, %v1614_v16  ;;  %v1655_v30 = vadd.f32 %v1654_v59, %v1482_v17  ;;  %v1486_v27 = vmax.f32 %v1154_v21, 0.0 }
 0x256   : > { %v1766_v31 = vpack.c.bf16 %v1750_v46, %v1750_v46  ;;  %v1643_v28 = vadd.f32 %v1642_v23, %v1485_v24 }
 0x257   : > { %v1767_v34 = vpack.c.bf16 %v1751_v26, %v1751_v26  ;;  %v1656_v35 = vadd.f32 %v1655_v30, %v1486_v27  ;;  %v1157_v36 = vpop.f32.mrb[24].mxu1 }
 0x258   : > { %v1869_v37 = vunpack.c.l.b16 %v1766_v31  ;;  %v1158_v38 = vadd.f32 %v1157_v36, %v3236_v44  ;;  %v1159_v39 = vpop.f32.mrb[25].mxu1 }
 0x259   : > { %v1870_v51 = vunpack.c.l.b16 %v1767_v34  ;;  %v1160_v41 = vadd.f32 %v1159_v39, %v3239_v57  ;;  %v1161_v42 = vpop.f32.mrb[26].mxu1 }
 0x25a   : > { %v1489_v43 = vmax.f32 %v1158_v38, 0.0  ;;  %v1162_v45 = vadd.f32 %v1161_v42, %v3236_v44  ;;  %v1163_v47 = vpop.f32.mrb[27].mxu1  ;;  %v3336_v48 = vsel %vm1881_vm1, %v1869_v37, %v1865_v19 }
 0x25b   : > { %v1490_v49 = vmax.f32 %v1160_v41, 0.0  ;;  %v1164_v50 = vadd.f32 %v1163_v47, %v3239_v57  ;;  %v3340_v52 = vsel %vm1881_vm1, %v1870_v51, %v1866_v61 }
 0x25c   : > { %v1644_v54 = vadd.f32 %v1643_v28, %v1489_v43  ;;  %v1493_v55 = vmax.f32 %v1162_v45, 0.0 }
 0x25d   : > { %v1657_v56 = vadd.f32 %v1656_v35, %v1490_v49  ;;  %v1494_v58 = vmax.f32 %v1164_v50, 0.0 }
 0x25e   : > { %v1645_v60 = vadd.f32 %v1644_v54, %v1493_v55 }
 0x25f   : > { %v1658_v9 = vadd.f32 %v1657_v56, %v1494_v58  ;;  %v1167_v62 = vpop.f32.mrb[28].mxu1 }
 0x260   : > { %v1168_v63 = vadd.f32 %v1167_v62, %v3236_v44  ;;  %v1169_v33 = vpop.f32.mrb[29].mxu1 }
 0x261   : > { %v1170_v0 = vadd.f32 %v1169_v33, %v3239_v57  ;;  %v1171_v1 = vpop.f32.mrb[30].mxu1 }
 0x262   : > { %v1497_v2 = vmax.f32 %v1168_v63, 0.0  ;;  %v1172_v3 = vadd.f32 %v1171_v1, %v3236_v44  ;;  %v1173_v4 = vpop.f32.mrb[31].mxu1 }
 0x263   : > { %v1498_v8 = vmax.f32 %v1170_v0, 0.0  ;;  %v1174_v59 = vadd.f32 %v1173_v4, %v3239_v57 }
 0x264   : > { %v1646_v18 = vadd.f32 %v1645_v60, %v1497_v2  ;;  %v1501_v29 = vmax.f32 %v1172_v3, 0.0 }
 0x265   : > { %v1659_v40 = vadd.f32 %v1658_v9, %v1498_v8  ;;  %v1502_v5 = vmax.f32 %v1174_v59, 0.0 }
 0x266   : > { %v1647_v20 = vadd.f32 %v1646_v18, %v1501_v29 }
 0x267   : > { %v1660_v32 = vadd.f32 %v1659_v40, %v1502_v5  ;;  %v1177_v10 = vpop.f32.mrb[32].mxu1 }
 0x268   : > { %v1648_v11 = vrot.slane %v1647_v20, 4  ;;  %v1178_v12 = vadd.f32 %v1177_v10, %v3236_v44  ;;  %v1179_v6 = vpop.f32.mrb[33].mxu1 }
 0x269   : > { %v1661_v13 = vrot.slane %v1660_v32, 4  ;;  %v1180_v14 = vadd.f32 %v1179_v6, %v3239_v57  ;;  %v1181_v15 = vpop.f32.mrb[34].mxu1 }
 0x26a   : > { %v1649_v16 = vadd.f32 %v1648_v11, %v1647_v20  ;;  %v1182_v17 = vadd.f32 %v1181_v15, %v3236_v44  ;;  %v1183_v21 = vpop.f32.mrb[35].mxu1  ;;  %v1505_v24 = vmax.f32 %v1178_v12, 0.0  ;;  %v2732_v15 = vld [vmem:[%s3572_s5 + $0xc0] sm:$0xff]  }
 0x26b   : > { %v1662_v22 = vadd.f32 %v1661_v13, %v1660_v32  ;;  %v1184_v46 = vadd.f32 %v1183_v21, %v3239_v57  ;;  %v1506_v30 = vmax.f32 %v1180_v14, 0.0  ;;  %2545 = vmatprep.subr.bf16.mxu0 %v2732_v15 }
 0x26c   : > { %v1650_v23 = vrot.slane %v1649_v16, 2  ;;  %v1509_v25 = vmax.f32 %v1182_v17, 0.0 }
 0x26d   : > { %v1663_v26 = vrot.slane %v1662_v22, 2  ;;  %v1510_v27 = vmax.f32 %v1184_v46, 0.0  ;;  %v884_v46 = vsub.s32 2, %v3211_v7 }
 0x26e   : > { %v1651_v31 = vadd.f32 %v1650_v23, %v1649_v16  ;;  %v1693_v28 = vadd.f32 %v1509_v25, %v1505_v24  ;;  %v888_v24 = vsub.s32 3, %v3211_v7 }
 0x26f   : > { %v1664_v34 = vadd.f32 %v1663_v26, %v1662_v22  ;;  %v1706_v35 = vadd.f32 %v1510_v27, %v1506_v30  ;;  %v1187_v36 = vpop.f32.mrb[36].mxu1 }
 0x270   : > { %v1652_v19 = vrot.slane %v1651_v31, 1  ;;  %v1188_v37 = vadd.f32 %v1187_v36, %v3236_v44  ;;  %v1189_v38 = vpop.f32.mrb[37].mxu1 }
 0x271   : > { %v1665_v39 = vrot.slane %v1664_v34, 1  ;;  %v1190_v61 = vadd.f32 %v1189_v38, %v3239_v57  ;;  %v1191_v51 = vpop.f32.mrb[38].mxu1 }
 0x272   : > { %v1653_v41 = vadd.f32 %v1652_v19, %v1651_v31  ;;  %v1513_v42 = vmax.f32 %v1188_v37, 0.0  ;;  %v1192_v43 = vadd.f32 %v1191_v51, %v3236_v44  ;;  %v1193_v45 = vpop.f32.mrb[39].mxu1  ;;  %v3379_v37 = vrot.slane %v3224_v53, %v888_v24 }
 0x273   : > { %v1666_v47 = vadd.f32 %v1665_v39, %v1664_v34  ;;  %v1514_v49 = vmax.f32 %v1190_v61, 0.0  ;;  %v1194_v50 = vadd.f32 %v1193_v45, %v3239_v57 }
 0x274   : > { %v1754_v54 = vmul.f32 0.015625, %v1653_v41  ;;  %v1694_v55 = vadd.f32 %v1693_v28, %v1513_v42  ;;  %v1517_v56 = vmax.f32 %v1192_v43, 0.0 }
 0x275   : > { %v1755_v58 = vmul.f32 0.015625, %v1666_v47  ;;  %v1707_v60 = vadd.f32 %v1706_v35, %v1514_v49  ;;  %v1518_v9 = vmax.f32 %v1194_v50, 0.0  ;;  %v3376_v35 = vrot.slane %v3224_v53, %v884_v46 }
 0x276   : > { %v1770_v62 = vpack.c.bf16 %v1754_v54, %v1754_v54  ;;  %v1695_v63 = vadd.f32 %v1694_v55, %v1517_v56 }
 0x277   : > { %v1771_v33 = vpack.c.bf16 %v1755_v58, %v1755_v58  ;;  %v1708_v0 = vadd.f32 %v1707_v60, %v1518_v9  ;;  %v1197_v1 = vpop.f32.mrb[40].mxu1 }
 0x278   : > { %v1873_v2 = vunpack.c.l.b16 %v1770_v62  ;;  %v1198_v3 = vadd.f32 %v1197_v1, %v3236_v44  ;;  %v1199_v4 = vpop.f32.mrb[41].mxu1 }
 0x279   : > { %v1874_v8 = vunpack.c.l.b16 %v1771_v33  ;;  %v1200_v59 = vadd.f32 %v1199_v4, %v3239_v57  ;;  %v1201_v18 = vpop.f32.mrb[42].mxu1 }
 0x27a   : > { %v1521_v29 = vmax.f32 %v1198_v3, 0.0  ;;  %v1202_v40 = vadd.f32 %v1201_v18, %v3236_v44  ;;  %v1203_v5 = vpop.f32.mrb[43].mxu1  ;;  %v3359_v20 = vsel %vm1883_vm2, %v1873_v2, %v3336_v48 }
 0x27b   : > { %v1522_v32 = vmax.f32 %v1200_v59, 0.0  ;;  %v1204_v10 = vadd.f32 %v1203_v5, %v3239_v57  ;;  %v3364_v11 = vsel %vm1883_vm2, %v1874_v8, %v3340_v52 }
 0x27c   : > { %v1696_v12 = vadd.f32 %v1695_v63, %v1521_v29  ;;  %v1525_v6 = vmax.f32 %v1202_v40, 0.0 }
 0x27d   : > { %v1709_v13 = vadd.f32 %v1708_v0, %v1522_v32  ;;  %v1526_v14 = vmax.f32 %v1204_v10, 0.0 }
 0x27e   : > { %v1697_v16 = vadd.f32 %v1696_v12, %v1525_v6 }
 0x27f   : > { %v1710_v17 = vadd.f32 %v1709_v13, %v1526_v14  ;;  %v1207_v21 = vpop.f32.mrb[44].mxu1 }
 0x280   : > { %v1208_v48 = vadd.f32 %v1207_v21, %v3236_v44  ;;  %v1209_v22 = vpop.f32.mrb[45].mxu1 }
 0x281   : > { %v1210_v52 = vadd.f32 %v1209_v22, %v3239_v57  ;;  %v1211_v23 = vpop.f32.mrb[46].mxu1 }
 0x282   : > { %v1529_v25 = vmax.f32 %v1208_v48, 0.0  ;;  %v1212_v26 = vadd.f32 %v1211_v23, %v3236_v44  ;;  %v1213_v30 = vpop.f32.mrb[47].mxu1 }
 0x283   : > { %v1530_v27 = vmax.f32 %v1210_v52, 0.0  ;;  %v1214_v31 = vadd.f32 %v1213_v30, %v3239_v57 }
 0x284   : > { %v1698_v28 = vadd.f32 %v1697_v16, %v1529_v25  ;;  %v1533_v34 = vmax.f32 %v1212_v26, 0.0 }
 0x285   : > { %v1711_v36 = vadd.f32 %v1710_v17, %v1530_v27  ;;  %v1534_v19 = vmax.f32 %v1214_v31, 0.0 }
 0x286   : > { %v1699_v38 = vadd.f32 %v1698_v28, %v1533_v34 }
 0x287   : > { %v1712_v39 = vadd.f32 %v1711_v36, %v1534_v19  ;;  %v1250_v7 = vpop.f32.mrb[48].mxu1 }
 0x288   : > { %v1700_v61 = vrot.slane %v1699_v38, 4  ;;  %v1251_v44 = vadd.f32 %v1250_v7, %v3376_v35  ;;  %v1252_v51 = vpop.f32.mrb[49].mxu1 }
 0x289   : > { %v1713_v41 = vrot.slane %v1712_v39, 4  ;;  %v1253_v57 = vadd.f32 %v1252_v51, %v3379_v37  ;;  %v1254_v42 = vpop.f32.mrb[50].mxu1  ;;  %v2733_v51 = vld [vmem:[%s3572_s5 + $0x80] sm:$0xff]  }
 0x28a   : > { %v1701_v43 = vadd.f32 %v1700_v61, %v1699_v38  ;;  %v1255_v45 = vadd.f32 %v1254_v42, %v3376_v35  ;;  %v1256_v47 = vpop.f32.mrb[51].mxu1  ;;  %v1411_v54 = vmax.f32 %v1251_v44, 0.0 }
 0x28b   : > { %v1714_v49 = vadd.f32 %v1713_v41, %v1712_v39  ;;  %v1257_v50 = vadd.f32 %v1256_v47, %v3379_v37  ;;  %v1412_v58 = vmax.f32 %v1253_v57, 0.0 }
 0x28c   : > { %v1702_v53 = vrot.slane %v1701_v43, 2  ;;  %v1415_v55 = vmax.f32 %v1255_v45, 0.0 }
 0x28d   : > { %v1715_v56 = vrot.slane %v1714_v49, 2  ;;  %v1416_v60 = vmax.f32 %v1257_v50, 0.0  ;;  %v2735_v50 = vld [vmem:[%s3572_s5 + $0x88] sm:$0xff]  }
 0x28e   : > { %v1703_v9 = vadd.f32 %v1702_v53, %v1701_v43  ;;  %v1563_v62 = vadd.f32 %v1415_v55, %v1411_v54  ;;  %v2736_v55 = vld [vmem:[%s3572_s5 + $0xd0] sm:$0xff]  }
 0x28f   : > { %v1716_v63 = vadd.f32 %v1715_v56, %v1714_v49  ;;  %v1576_v33 = vadd.f32 %v1416_v60, %v1412_v58  ;;  %v1260_v0 = vpop.f32.mrb[52].mxu1 }
 0x290   : > { %v1704_v1 = vrot.slane %v1703_v9, 1  ;;  %v1261_v2 = vadd.f32 %v1260_v0, %v3376_v35  ;;  %v1262_v3 = vpop.f32.mrb[53].mxu1  ;;  %v2737_v0 = vld [vmem:[%s3572_s5 + $0x90] sm:$0xff]  }
 0x291   : > { %v1717_v4 = vrot.slane %v1716_v63, 1  ;;  %v1263_v8 = vadd.f32 %v1262_v3, %v3379_v37  ;;  %v1264_v59 = vpop.f32.mrb[54].mxu1  ;;  %v2738_v3 = vld [vmem:[%s3572_s5 + $0xd8] sm:$0xff]  }
 0x292   : > { %v1705_v18 = vadd.f32 %v1704_v1, %v1703_v9  ;;  %v1419_v29 = vmax.f32 %v1261_v2, 0.0  ;;  %v1265_v40 = vadd.f32 %v1264_v59, %v3376_v35  ;;  %v1266_v5 = vpop.f32.mrb[55].mxu1 }
 0x293   : > { %v1718_v32 = vadd.f32 %v1717_v4, %v1716_v63  ;;  %v1420_v10 = vmax.f32 %v1263_v8, 0.0  ;;  %v1267_v12 = vadd.f32 %v1266_v5, %v3379_v37 }
 0x294   : > { %v1758_v6 = vmul.f32 0.015625, %v1705_v18  ;;  %v1564_v13 = vadd.f32 %v1563_v62, %v1419_v29  ;;  %v1423_v14 = vmax.f32 %v1265_v40, 0.0  ;;  %v2739_v40 = vld [vmem:[%s3572_s5 + $0x98] sm:$0xff]  }
 0x295   : > { %v1759_v15 = vmul.f32 0.015625, %v1718_v32  ;;  %v1577_v16 = vadd.f32 %v1576_v33, %v1420_v10  ;;  %v1424_v17 = vmax.f32 %v1267_v12, 0.0  ;;  %v2740_v10 = vld [vmem:[%s3572_s5 + $0xe0] sm:$0xff]  }
 0x296   : > { %v1774_v21 = vpack.c.bf16 %v1758_v6, %v1758_v6  ;;  %v1565_v48 = vadd.f32 %v1564_v13, %v1423_v14 }
 0x297   : > { %v1578_v22 = vadd.f32 %v1577_v16, %v1424_v17  ;;  %v1270_v46 = vpop.f32.mrb[56].mxu1  ;;  %v1775_v52 = vpack.c.bf16 %v1759_v15, %v1759_v15  ;;  %v2741_v16 = vld [vmem:[%s3572_s5 + $0xa0] sm:$0xff]  }
 0x298   : > { %v1877_v23 = vunpack.c.l.b16 %v1774_v21  ;;  %v1271_v24 = vadd.f32 %v1270_v46, %v3376_v35  ;;  %v1272_v25 = vpop.f32.mrb[57].mxu1 }
 0x299   : > { %v1273_v26 = vadd.f32 %v1272_v25, %v3379_v37  ;;  %v1274_v30 = vpop.f32.mrb[58].mxu1  ;;  %v1878_v27 = vunpack.c.l.b16 %v1775_v52  ;;  %v2743_v25 = vld [vmem:[%s3572_s5 + $0xa8] sm:$0xff]  }
 0x29a   : > { %v1427_v31 = vmax.f32 %v1271_v24, 0.0  ;;  %v1275_v28 = vadd.f32 %v1274_v30, %v3376_v35  ;;  %v1276_v34 = vpop.f32.mrb[59].mxu1  ;;  %v1886_v36 = vsel %vm1885_vm3, %v1877_v23, %v3359_v20  ;;  %v2734_v20 = vld [vmem:[%s3572_s5 + $0xc8] sm:$0xff]  }
 0x29b   : > { %v1428_v19 = vmax.f32 %v1273_v26, 0.0  ;;  %v1277_v38 = vadd.f32 %v1276_v34, %v3379_v37  ;;  %v1889_v39 = vsel %vm1885_vm3, %v1878_v27, %v3364_v11  ;;  %v1896_v42 = vpack.c.b16 %v1886_v36, %v1886_v36  ;;  %v2744_v27 = vld [vmem:[%s3572_s5 + $0xf0] sm:$0xff]  }
 0x29c   : > { %v1566_v7 = vadd.f32 %v1565_v48, %v1427_v31  ;;  %v1431_v61 = vmax.f32 %v1275_v28, 0.0  ;;  %v1897_v44 = vpack.c.b16 %v1889_v39, %v1889_v39  ;;  %v2742_v48 = vld [vmem:[%s3572_s5 + $0xe8] sm:$0xff]  }
 0x29d   : > { %v1579_v41 = vadd.f32 %v1578_v22, %v1428_v19  ;;  %v1432_v57 = vmax.f32 %v1277_v38, 0.0 }
 0x29e   : > { %v1567_v43 = vadd.f32 %v1566_v7, %v1431_v61  ;;  %2128 = vmatprep.mubr.bf16.mxu0 %v1897_v44  ;;  %v2745_v7 = vld [vmem:[%s3572_s5 + $0xb0] sm:$0xff]  }
 0x29f   : > { %v1580_v45 = vadd.f32 %v1579_v41, %v1432_v57  ;;  %v1280_v47 = vpop.f32.mrb[60].mxu1  ;;  %2129 = vmatmul.mubr.bf16.vlgmr.msra.gmra.mrb[80].mxu0 %v1896_v42 }
 0x2a0   : > { %v1281_v11 = vadd.f32 %v1280_v47, %v3376_v35  ;;  %v1282_v49 = vpop.f32.mrb[61].mxu1  ;;  %2546 = vmatpush3.bf16.msra.mxu0 %v2733_v51  ;;  %v2746_v51 = vld [vmem:[%s3572_s5 + $0xf8] sm:$0xff]  }
 0x2a1   : > { %v1283_v53 = vadd.f32 %v1282_v49, %v3379_v37  ;;  %v1284_v54 = vpop.f32.mrb[62].mxu1  ;;  %2547 = vmatprep.subr.bf16.mxu0 %v2734_v20  ;;  %v2747_v47 = vld [vmem:[%s3572_s5 + $0xb8] sm:$0xff]  }
 0x2a2   : > { %v1435_v56 = vmax.f32 %v1281_v11, 0.0  ;;  %v1285_v58 = vadd.f32 %v1284_v54, %v3376_v35  ;;  %v1286_v60 = vpop.f32.mrb[63].mxu1 }
 0x2a3   : > { %v1436_v9 = vmax.f32 %v1283_v53, 0.0  ;;  %v1287_v62 = vadd.f32 %v1286_v60, %v3379_v37 }
 0x2a4   : > { %v1568_v63 = vadd.f32 %v1567_v43, %v1435_v56  ;;  %v1439_v33 = vmax.f32 %v1285_v58, 0.0  ;;  %2548 = vmatpush3.bf16.msra.mxu0 %v2735_v50 }
 0x2a5   : > { %v1581_v1 = vadd.f32 %v1580_v45, %v1436_v9  ;;  %v1440_v2 = vmax.f32 %v1287_v62, 0.0  ;;  %2549 = vmatprep.subr.bf16.mxu0 %v2736_v55 }
 0x2a6   : > { %v3419_v4 = vadd.f32 %v1568_v63, %v1439_v33 }
 0x2a7   : > { %v3421_v8 = vadd.f32 %v1581_v1, %v1440_v2  ;;  %v1290_v59 = vpop.f32.mrb[64].mxu1 }
 0x2a8   : > { %v1291_v18 = vadd.f32 %v1290_v59, %v3376_v35  ;;  %v1292_v29 = vpop.f32.mrb[65].mxu1  ;;  %2550 = vmatpush3.bf16.msra.mxu0 %v2737_v0  ;;  %v1570_v20 = vrot.slane %v3419_v4, 4 }
 0x2a9   : > { %v1293_v5 = vadd.f32 %v1292_v29, %v3379_v37  ;;  %v1294_v32 = vpop.f32.mrb[66].mxu1  ;;  %2551 = vmatprep.subr.bf16.mxu0 %v2738_v3  ;;  %v1583_v11 = vrot.slane %v3421_v8, 4 }
 0x2aa   : > { %v1295_v12 = vadd.f32 %v1294_v32, %v3376_v35  ;;  %v1296_v6 = vpop.f32.mrb[67].mxu1  ;;  %v1443_v14 = vmax.f32 %v1291_v18, 0.0  ;;  %v1571_v60 = vadd.f32 %v1570_v20, %v3419_v4 }
 0x2ab   : > { %v1297_v13 = vadd.f32 %v1296_v6, %v3379_v37  ;;  %v1444_v17 = vmax.f32 %v1293_v5, 0.0  ;;  %v1584_v63 = vadd.f32 %v1583_v11, %v3421_v8 }
 0x2ac   : > { %v1447_v15 = vmax.f32 %v1295_v12, 0.0  ;;  %2552 = vmatpush3.bf16.msra.mxu0 %v2739_v40  ;;  %v1572_v59 = vrot.slane %v1571_v60, 2 }
 0x2ad   : > { %v1448_v21 = vmax.f32 %v1297_v13, 0.0  ;;  %2553 = vmatprep.subr.bf16.mxu0 %v2740_v10  ;;  %v1585_v40 = vrot.slane %v1584_v63, 2 }
 0x2ae   : > { %v1615_v22 = vadd.f32 %v1447_v15, %v1443_v14  ;;  %v1573_v13 = vadd.f32 %v1572_v59, %v1571_v60 }
 0x2af   : > { %v1628_v46 = vadd.f32 %v1448_v21, %v1444_v17  ;;  %v1300_v52 = vpop.f32.mrb[68].mxu1 }
 0x2b0   : > { %v1301_v23 = vadd.f32 %v1300_v52, %v3376_v35  ;;  %v1302_v24 = vpop.f32.mrb[69].mxu1  ;;  %2554 = vmatpush3.bf16.msra.mxu0 %v2741_v16  ;;  %v1586_v16 = vadd.f32 %v1585_v40, %v1584_v63  ;;  %v1574_v52 = vrot.slane %v1573_v13, 1 }
 0x2b1   : > { %v1303_v26 = vadd.f32 %v1302_v24, %v3379_v37  ;;  %v1304_v30 = vpop.f32.mrb[70].mxu1  ;;  %2555 = vmatprep.subr.bf16.mxu0 %v2742_v48 }
 0x2b2   : > { %v1451_v31 = vmax.f32 %v1301_v23, 0.0  ;;  %v1305_v28 = vadd.f32 %v1304_v30, %v3376_v35  ;;  %v1306_v34 = vpop.f32.mrb[71].mxu1 }
 0x2b3   : > { %v1452_v36 = vmax.f32 %v1303_v26, 0.0  ;;  %v1307_v19 = vadd.f32 %v1306_v34, %v3379_v37  ;;  %v1587_v26 = vrot.slane %v1586_v16, 1 }
 0x2b4   : > { %v1616_v38 = vadd.f32 %v1615_v22, %v1451_v31  ;;  %v1455_v39 = vmax.f32 %v1305_v28, 0.0  ;;  %2556 = vmatpush3.bf16.msra.mxu0 %v2743_v25 }
 0x2b5   : > { %v1629_v61 = vadd.f32 %v1628_v46, %v1452_v36  ;;  %v1456_v44 = vmax.f32 %v1307_v19, 0.0  ;;  %2557 = vmatprep.subr.bf16.mxu0 %v2744_v27 }
 0x2b6   : > { %v1617_v41 = vadd.f32 %v1616_v38, %v1455_v39  ;;  %v1575_v39 = vadd.f32 %v1574_v52, %v1573_v13 }
 0x2b7   : > { %v1630_v57 = vadd.f32 %v1629_v61, %v1456_v44  ;;  %v1310_v42 = vpop.f32.mrb[72].mxu1 }
 0x2b8   : > { %v1311_v43 = vadd.f32 %v1310_v42, %v3376_v35  ;;  %v1312_v45 = vpop.f32.mrb[73].mxu1  ;;  %2558 = vmatpush3.bf16.msra.mxu0 %v2745_v7 }
 0x2b9   : > { %v1313_v49 = vadd.f32 %v1312_v45, %v3379_v37  ;;  %v1314_v50 = vpop.f32.mrb[74].mxu1  ;;  %2559 = vmatprep.subr.bf16.mxu0 %v2746_v51  ;;  %v1588_v51 = vadd.f32 %v1587_v26, %v1586_v16 }
 0x2ba   : > { %v1459_v53 = vmax.f32 %v1311_v43, 0.0  ;;  %v1315_v54 = vadd.f32 %v1314_v50, %v3376_v35  ;;  %v1316_v55 = vpop.f32.mrb[75].mxu1 }
 0x2bb   : > { %v1460_v56 = vmax.f32 %v1313_v49, 0.0  ;;  %v1317_v58 = vadd.f32 %v1316_v55, %v3379_v37  ;;  %v1748_v49 = vmul.f32 0.015625, %v1575_v39  ;;  %v1749_v55 = vmul.f32 0.015625, %v1588_v51 }
 0x2bc   : > { %v1618_v9 = vadd.f32 %v1617_v41, %v1459_v53  ;;  %v1463_v62 = vmax.f32 %v1315_v54, 0.0  ;;  %2560 = vmatpush3.bf16.msra.mxu0 %v2747_v47 }
 0x2bd   : > { %v1631_v33 = vadd.f32 %v1630_v57, %v1460_v56  ;;  %v1464_v0 = vmax.f32 %v1317_v58, 0.0  ;;  %v1765_v40 = vpack.c.bf16 %v1749_v55, %v1749_v55 }
 0x2be   : > { %v1619_v1 = vadd.f32 %v1618_v9, %v1463_v62 }
 0x2bf   : > { %v1632_v2 = vadd.f32 %v1631_v33, %v1464_v0  ;;  %v1320_v3 = vpop.f32.mrb[76].mxu1 }
 0x2c0   : > { %v1321_v18 = vadd.f32 %v1320_v3, %v3376_v35  ;;  %v1322_v29 = vpop.f32.mrb[77].mxu1  ;;  %v1764_v3 = vpack.c.bf16 %v1748_v49, %v1748_v49 }
 0x2c1   : > { %v1323_v5 = vadd.f32 %v1322_v29, %v3379_v37  ;;  %v1324_v32 = vpop.f32.mrb[78].mxu1 }
 0x2c2   : > { %v1467_v10 = vmax.f32 %v1321_v18, 0.0  ;;  %v1325_v4 = vadd.f32 %v1324_v32, %v3376_v35  ;;  %v1326_v12 = vpop.f32.mrb[79].mxu1 }
 0x2c3   : > { %v1468_v6 = vmax.f32 %v1323_v5, 0.0  ;;  %v1327_v8 = vadd.f32 %v1326_v12, %v3379_v37 }
 0x2c4   : > { %v1620_v14 = vadd.f32 %v1619_v1, %v1467_v10  ;;  %v1471_v15 = vmax.f32 %v1325_v4, 0.0 }
 0x2c5   : > { %v1633_v17 = vadd.f32 %v1632_v2, %v1468_v6  ;;  %v1472_v21 = vmax.f32 %v1327_v8, 0.0 }
 0x2c6   : > { %v1621_v48 = vadd.f32 %v1620_v14, %v1471_v15  ;;  %v1867_v14 = vunpack.c.l.b16 %v1764_v3 }
 0x2c7   : > { %v1634_v22 = vadd.f32 %v1633_v17, %v1472_v21  ;;  %v1330_v46 = vpop.f32.mrb[80].mxu1  ;;  %v1868_v21 = vunpack.c.l.b16 %v1765_v40 }
 0x2c8   : > { %v1622_v23 = vrot.slane %v1621_v48, 4  ;;  %v1331_v24 = vadd.f32 %v1330_v46, %v3376_v35  ;;  %v1332_v25 = vpop.f32.mrb[81].mxu1 }
 0x2c9   : > { %v1635_v30 = vrot.slane %v1634_v22, 4  ;;  %v1333_v27 = vadd.f32 %v1332_v25, %v3379_v37  ;;  %v1334_v31 = vpop.f32.mrb[82].mxu1 }
 0x2ca   : > { %v1623_v28 = vadd.f32 %v1622_v23, %v1621_v48  ;;  %v1335_v34 = vadd.f32 %v1334_v31, %v3376_v35  ;;  %v1336_v36 = vpop.f32.mrb[83].mxu1  ;;  %v1475_v61 = vmax.f32 %v1331_v24, 0.0 }
 0x2cb   : > { %v1636_v19 = vadd.f32 %v1635_v30, %v1634_v22  ;;  %v1337_v38 = vadd.f32 %v1336_v36, %v3379_v37  ;;  %v1476_v57 = vmax.f32 %v1333_v27, 0.0 }
 0x2cc   : > { %v1624_v7 = vrot.slane %v1623_v28, 2  ;;  %v1479_v44 = vmax.f32 %v1335_v34, 0.0 }
 0x2cd   : > { %v1637_v41 = vrot.slane %v1636_v19, 2  ;;  %v1480_v42 = vmax.f32 %v1337_v38, 0.0 }
 0x2ce   : > { %v1625_v20 = vadd.f32 %v1624_v7, %v1623_v28  ;;  %v1667_v43 = vadd.f32 %v1479_v44, %v1475_v61 }
 0x2cf   : > { %v1638_v45 = vadd.f32 %v1637_v41, %v1636_v19  ;;  %v1680_v47 = vadd.f32 %v1480_v42, %v1476_v57  ;;  %v1340_v11 = vpop.f32.mrb[84].mxu1 }
 0x2d0   : > { %v1626_v50 = vrot.slane %v1625_v20, 1  ;;  %v1341_v53 = vadd.f32 %v1340_v11, %v3376_v35  ;;  %v1342_v54 = vpop.f32.mrb[85].mxu1 }
 0x2d1   : > { %v1639_v56 = vrot.slane %v1638_v45, 1  ;;  %v1343_v58 = vadd.f32 %v1342_v54, %v3379_v37  ;;  %v1344_v60 = vpop.f32.mrb[86].mxu1 }
 0x2d2   : > { %v1627_v9 = vadd.f32 %v1626_v50, %v1625_v20  ;;  %v1483_v62 = vmax.f32 %v1341_v53, 0.0  ;;  %v1345_v63 = vadd.f32 %v1344_v60, %v3376_v35  ;;  %v1346_v33 = vpop.f32.mrb[87].mxu1 }
 0x2d3   : > { %v1640_v0 = vadd.f32 %v1639_v56, %v1638_v45  ;;  %v1484_v1 = vmax.f32 %v1343_v58, 0.0  ;;  %v1347_v2 = vadd.f32 %v1346_v33, %v3379_v37 }
 0x2d4   : > { %v1752_v59 = vmul.f32 0.015625, %v1627_v9  ;;  %v1668_v18 = vadd.f32 %v1667_v43, %v1483_v62  ;;  %v1487_v29 = vmax.f32 %v1345_v63, 0.0 }
 0x2d5   : > { %v1753_v5 = vmul.f32 0.015625, %v1640_v0  ;;  %v1681_v32 = vadd.f32 %v1680_v47, %v1484_v1  ;;  %v1488_v10 = vmax.f32 %v1347_v2, 0.0 }
 0x2d6   : > { %v1768_v4 = vpack.c.bf16 %v1752_v59, %v1752_v59  ;;  %v1669_v12 = vadd.f32 %v1668_v18, %v1487_v29 }
 0x2d7   : > { %v1769_v6 = vpack.c.bf16 %v1753_v5, %v1753_v5  ;;  %v1682_v8 = vadd.f32 %v1681_v32, %v1488_v10  ;;  %v1350_v13 = vpop.f32.mrb[88].mxu1 }
 0x2d8   : > { %v1871_v15 = vunpack.c.l.b16 %v1768_v4  ;;  %v1351_v16 = vadd.f32 %v1350_v13, %v3376_v35  ;;  %v1352_v17 = vpop.f32.mrb[89].mxu1 }
 0x2d9   : > { %v1872_v48 = vunpack.c.l.b16 %v1769_v6  ;;  %v1353_v22 = vadd.f32 %v1352_v17, %v3379_v37  ;;  %v1354_v46 = vpop.f32.mrb[90].mxu1 }
 0x2da   : > { %v1491_v52 = vmax.f32 %v1351_v16, 0.0  ;;  %v1355_v23 = vadd.f32 %v1354_v46, %v3376_v35  ;;  %v1356_v24 = vpop.f32.mrb[91].mxu1  ;;  %v3482_v25 = vsel %vm1881_vm1, %v1871_v15, %v1867_v14 }
 0x2db   : > { %v1492_v26 = vmax.f32 %v1353_v22, 0.0  ;;  %v1357_v30 = vadd.f32 %v1356_v24, %v3379_v37  ;;  %v3486_v27 = vsel %vm1881_vm1, %v1872_v48, %v1868_v21 }
 0x2dc   : > { %v1670_v31 = vadd.f32 %v1669_v12, %v1491_v52  ;;  %v1495_v28 = vmax.f32 %v1355_v23, 0.0 }
 0x2dd   : > { %v1683_v34 = vadd.f32 %v1682_v8, %v1492_v26  ;;  %v1496_v36 = vmax.f32 %v1357_v30, 0.0 }
 0x2de   : > { %v1671_v19 = vadd.f32 %v1670_v31, %v1495_v28 }
 0x2df   : > { %v1684_v38 = vadd.f32 %v1683_v34, %v1496_v36  ;;  %v1360_v39 = vpop.f32.mrb[92].mxu1 }
 0x2e0   : > { %v1361_v7 = vadd.f32 %v1360_v39, %v3376_v35  ;;  %v1362_v61 = vpop.f32.mrb[93].mxu1 }
 0x2e1   : > { %v1363_v44 = vadd.f32 %v1362_v61, %v3379_v37  ;;  %v1364_v51 = vpop.f32.mrb[94].mxu1 }
 0x2e2   : > { %v1499_v41 = vmax.f32 %v1361_v7, 0.0  ;;  %v1365_v57 = vadd.f32 %v1364_v51, %v3376_v35  ;;  %v1366_v42 = vpop.f32.mrb[95].mxu1 }
 0x2e3   : > { %v1500_v20 = vmax.f32 %v1363_v44, 0.0  ;;  %v1367_v43 = vadd.f32 %v1366_v42, %v3379_v37 }
 0x2e4   : > { %v1672_v45 = vadd.f32 %v1671_v19, %v1499_v41  ;;  %v1503_v47 = vmax.f32 %v1365_v57, 0.0 }
 0x2e5   : > { %v1685_v11 = vadd.f32 %v1684_v38, %v1500_v20  ;;  %v1504_v49 = vmax.f32 %v1367_v43, 0.0 }
 0x2e6   : > { %v1673_v50 = vadd.f32 %v1672_v45, %v1503_v47 }
 0x2e7   : > { %v1686_v53 = vadd.f32 %v1685_v11, %v1504_v49  ;;  %v1370_v54 = vpop.f32.mrb[96].mxu1 }
 0x2e8   : > { %v1674_v55 = vrot.slane %v1673_v50, 4  ;;  %v1371_v56 = vadd.f32 %v1370_v54, %v3376_v35  ;;  %v1372_v58 = vpop.f32.mrb[97].mxu1 }
 0x2e9   : > { %v1687_v60 = vrot.slane %v1686_v53, 4  ;;  %v1373_v9 = vadd.f32 %v1372_v58, %v3379_v37  ;;  %v1374_v62 = vpop.f32.mrb[98].mxu1 }
 0x2ea   : > { %v1675_v63 = vadd.f32 %v1674_v55, %v1673_v50  ;;  %v1375_v33 = vadd.f32 %v1374_v62, %v3376_v35  ;;  %v1376_v0 = vpop.f32.mrb[99].mxu1  ;;  %v1507_v59 = vmax.f32 %v1371_v56, 0.0 }
 0x2eb   : > { %v1688_v1 = vadd.f32 %v1687_v60, %v1686_v53  ;;  %v1377_v2 = vadd.f32 %v1376_v0, %v3379_v37  ;;  %v1508_v40 = vmax.f32 %v1373_v9, 0.0 }
 0x2ec   : > { %v1676_v3 = vrot.slane %v1675_v63, 2  ;;  %v1511_v18 = vmax.f32 %v1375_v33, 0.0 }
 0x2ed   : > { %v1689_v29 = vrot.slane %v1688_v1, 2  ;;  %v1512_v5 = vmax.f32 %v1377_v2, 0.0 }
 0x2ee   : > { %v1677_v32 = vadd.f32 %v1676_v3, %v1675_v63  ;;  %v1719_v10 = vadd.f32 %v1511_v18, %v1507_v59 }
 0x2ef   : > { %v1690_v4 = vadd.f32 %v1689_v29, %v1688_v1  ;;  %v1732_v12 = vadd.f32 %v1512_v5, %v1508_v40  ;;  %v1380_v6 = vpop.f32.mrb[100].mxu1 }
 0x2f0   : > { %v1678_v8 = vrot.slane %v1677_v32, 1  ;;  %v1381_v13 = vadd.f32 %v1380_v6, %v3376_v35  ;;  %v1382_v14 = vpop.f32.mrb[101].mxu1 }
 0x2f1   : > { %v1691_v15 = vrot.slane %v1690_v4, 1  ;;  %v1383_v16 = vadd.f32 %v1382_v14, %v3379_v37  ;;  %v1384_v17 = vpop.f32.mrb[102].mxu1 }
 0x2f2   : > { %v1679_v21 = vadd.f32 %v1678_v8, %v1677_v32  ;;  %v1515_v48 = vmax.f32 %v1381_v13, 0.0  ;;  %v1385_v22 = vadd.f32 %v1384_v17, %v3376_v35  ;;  %v1386_v46 = vpop.f32.mrb[103].mxu1 }
 0x2f3   : > { %v1692_v52 = vadd.f32 %v1691_v15, %v1690_v4  ;;  %v1516_v23 = vmax.f32 %v1383_v16, 0.0  ;;  %v1387_v24 = vadd.f32 %v1386_v46, %v3379_v37 }
 0x2f4   : > { %v1756_v26 = vmul.f32 0.015625, %v1679_v21  ;;  %v1720_v30 = vadd.f32 %v1719_v10, %v1515_v48  ;;  %v1519_v31 = vmax.f32 %v1385_v22, 0.0 }
 0x2f5   : > { %v1757_v28 = vmul.f32 0.015625, %v1692_v52  ;;  %v1733_v34 = vadd.f32 %v1732_v12, %v1516_v23  ;;  %v1520_v36 = vmax.f32 %v1387_v24, 0.0 }
 0x2f6   : > { %v1772_v19 = vpack.c.bf16 %v1756_v26, %v1756_v26  ;;  %v1721_v38 = vadd.f32 %v1720_v30, %v1519_v31 }
 0x2f7   : > { %v1773_v39 = vpack.c.bf16 %v1757_v28, %v1757_v28  ;;  %v1734_v7 = vadd.f32 %v1733_v34, %v1520_v36  ;;  %v1390_v61 = vpop.f32.mrb[104].mxu1 }
 0x2f8   : > { %v1875_v44 = vunpack.c.l.b16 %v1772_v19  ;;  %v1391_v51 = vadd.f32 %v1390_v61, %v3376_v35  ;;  %v1392_v41 = vpop.f32.mrb[105].mxu1 }
 0x2f9   : > { %v1876_v57 = vunpack.c.l.b16 %v1773_v39  ;;  %v1393_v42 = vadd.f32 %v1392_v41, %v3379_v37  ;;  %v1394_v20 = vpop.f32.mrb[106].mxu1 }
 0x2fa   : > { %v1523_v43 = vmax.f32 %v1391_v51, 0.0  ;;  %v1395_v45 = vadd.f32 %v1394_v20, %v3376_v35  ;;  %v1396_v47 = vpop.f32.mrb[107].mxu1  ;;  %v1891_v11 = vsel %vm1883_vm2, %v1875_v44, %v3482_v25 }
 0x2fb   : > { %v1524_v49 = vmax.f32 %v1393_v42, 0.0  ;;  %v1397_v50 = vadd.f32 %v1396_v47, %v3379_v37  ;;  %v1894_v53 = vsel %vm1883_vm2, %v1876_v57, %v3486_v27 }
 0x2fc   : > { %v1722_v54 = vadd.f32 %v1721_v38, %v1523_v43  ;;  %v1527_v55 = vmax.f32 %v1395_v45, 0.0  ;;  %v2177_v43 = vld [vmem:[%s3574_s7] sm:$0xf] }
 0x2fd   : > { %v1735_v56 = vadd.f32 %v1734_v7, %v1524_v49  ;;  %v1528_v58 = vmax.f32 %v1397_v50, 0.0  ;;  %v2373_v7 = vld [vmem:[%s3573_s6] ss:$0 sm:$0xff] }
 0x2fe   : > { %v1723_v60 = vadd.f32 %v1722_v54, %v1527_v55 }
 0x2ff   : > { %v1736_v9 = vadd.f32 %v1735_v56, %v1528_v58  ;;  %v1400_v62 = vpop.f32.mrb[108].mxu1 }
 0x300   : > { %v1401_v63 = vadd.f32 %v1400_v62, %v3376_v35  ;;  %v1402_v33 = vpop.f32.mrb[109].mxu1 }
 0x301   : > { %v1403_v0 = vadd.f32 %v1402_v33, %v3379_v37  ;;  %v1404_v1 = vpop.f32.mrb[110].mxu1 }
 0x302   : > { %v1531_v25 = vmax.f32 %v1401_v63, 0.0  ;;  %v1405_v2 = vadd.f32 %v1404_v1, %v3376_v35  ;;  %v1406_v3 = vpop.f32.mrb[111].mxu1 }
 0x303   : > { %v1532_v59 = vmax.f32 %v1403_v0, 0.0  ;;  %v1407_v27 = vadd.f32 %v1406_v3, %v3379_v37 }
 0x304   : > { %v1724_v18 = vadd.f32 %v1723_v60, %v1531_v25  ;;  %v1535_v29 = vmax.f32 %v1405_v2, 0.0 }
 0x305   : > { %v1737_v40 = vadd.f32 %v1736_v9, %v1532_v59  ;;  %v1536_v5 = vmax.f32 %v1407_v27, 0.0 }
 0x306   : > { %v1725_v32 = vadd.f32 %v1724_v18, %v1535_v29 }
 0x307   : > { %v1738_v10 = vadd.f32 %v1737_v40, %v1536_v5 }
 0x308   : > { %v1726_v4 = vrot.slane %v1725_v32, 4 }
 0x309   : > { %v1739_v12 = vrot.slane %v1738_v10, 4 }
 0x30a   : > { %v1727_v6 = vadd.f32 %v1726_v4, %v1725_v32 }
 0x30b   : > { %v1740_v8 = vadd.f32 %v1739_v12, %v1738_v10 }
 0x30c   : > { %v1728_v13 = vrot.slane %v1727_v6, 2 }
 0x30d   : > { %v1741_v14 = vrot.slane %v1740_v8, 2 }
 0x30e   : > { %v1729_v15 = vadd.f32 %v1728_v13, %v1727_v6 }
 0x30f   : > { %v1742_v16 = vadd.f32 %v1741_v14, %v1740_v8 }
 0x310   : > { %v1730_v17 = vrot.slane %v1729_v15, 1 }
 0x311   : > { %v1743_v35 = vrot.slane %v1742_v16, 1 }
 0x312   : > { %v1731_v21 = vadd.f32 %v1730_v17, %v1729_v15 }
 0x313   : > { %v1744_v48 = vadd.f32 %v1743_v35, %v1742_v16 }
 0x314   : > { %v1760_v22 = vmul.f32 0.015625, %v1731_v21 }
 0x315   : > { %v1761_v37 = vmul.f32 0.015625, %v1744_v48 }
 0x316   : > { %v1776_v46 = vpack.c.bf16 %v1760_v22, %v1760_v22 }
 0x317   : > { %v1777_v52 = vpack.c.bf16 %v1761_v37, %v1761_v37 }
 0x318   : > { %v1879_v23 = vunpack.c.l.b16 %v1776_v46 }
 0x319   : > { %v1880_v24 = vunpack.c.l.b16 %v1777_v52 }
 0x31a   : > { %v1892_v26 = vsel %vm1885_vm3, %v1879_v23, %v1891_v11 }
 0x31b   : > { %v1895_v30 = vsel %vm1885_vm3, %v1880_v24, %v1894_v53  ;;  %v1898_v28 = vpack.c.b16 %v1892_v26, %v1892_v26 }
 0x31c   : > { %v1899_v31 = vpack.c.b16 %v1895_v30, %v1895_v30 }
 0x31e   : > { %2168 = vmatprep.mubr.bf16.mxu0 %v1899_v31 }
 0x31f   : > { %2169 = vmatmul.mubr.bf16.vlgmr.msra.gmra.mrb[84].mxu0 %v1898_v28 }
 0x372   : > { %v2539_v34 = vpop.f32.mrb[80].mxu0 }
 0x373   : > { %v2540_v36 = vpop.f32.mrb[81].mxu0 }
 0x374   : > { %v2541_v19 = vadd.f32 %v2540_v36, %v2539_v34  ;;  %v2542_v38 = vpop.f32.mrb[82].mxu0 }
 0x375   : > { %v2543_v39 = vpop.f32.mrb[83].mxu0 }
 0x376   : > { %v2131_v51 = vadd.f32 %v2541_v19, %v2373_v7 }
 0x3f2   : > { %v2561_v61 = vpop.f32.mrb[84].mxu0 }
 0x3f3   : > { %v2562_v44 = vpop.f32.mrb[85].mxu0 }
 0x3f4   : > { %v2563_v41 = vadd.f32 %v2562_v44, %v2561_v61  ;;  %v2564_v57 = vpop.f32.mrb[86].mxu0 }
 0x3f5   : > { %v2565_v42 = vpop.f32.mrb[87].mxu0 }
 0x3f6   : > { %v2171_v20 = vadd.f32 %v2563_v41, %v2131_v51 }
 0x3f8   : > { %v2176_v45 = vmax.f32 %v2171_v20, 0.0 }
 0x3fa   : > { %v2178_v47 = vadd.f32 %v2177_v43, %v2176_v45 }
 0x3fc   : > { %v2179_v11 = vpack.c.bf16 %v2178_v47, %v2178_v47 }
 0x3fe   : > { %2181 = vst.msk [vmem:[%s313_s12] sm:$0x3] %vm2180_vm4, %v2179_v11 }
 0x3ff   : > { %2789 = shalt.err (!%p2786_p7)
}
 0x400   : > { %s2790_s24 = scalar_lea.hbm %s3525_s22, 32  ;;  %s2794_s10 = scalar_lea.hbm %s3575_s8, 64 }
 0x401   : > { %p2791_p8 = scmp.ne.s32.totalorder %s3525_s22, %s2790_s24  ;;  %p2795_p1 = scmp.lt.u32.totalorder %s3525_s22, %s3575_s8 }
 0x402   : > { %p2796_p0 = scmp.lt.u32.totalorder %s2794_s10, %s2790_s24  ;;  %p2798_p6 = scmp.lt.u32.totalorder %s2790_s24, %s3525_s22 }
 0x403   : > { %p2792_p11 = pnand %p2791_p8, %p3586_p9 }
 0x404   : > { %p2797_p5 = por %p2796_p0, %p2795_p1 }
 0x405   : > { %p2793_p13 = pneg %p2792_p11 }
 0x406   : > { %p2799_p10 = por %p2798_p6, %p2797_p5 }
 0x408   : > { %p2800_p12 = pnand %p2799_p10, %p2793_p13 }
 0x40a   : > { %2803 = shalt.err (!%p2800_p12)
}
 0x40b   : > { %2579 = dma.vmem_to_hbm [thread:$0]  (%p3586_p9), %s3527_s18, 32, %s3525_s22, %s2183_s13  }
 0x40c PF: > { %p2591_p2 = scmp.ge.s32.totalorder %s2842_s30, 2  ;;  %s2208_s23 = sand.u32 1, %s2830_s27  }
 0x40d   : > { %p3587_p3 = scmp.ne.s32.totalorder %s3580_s16, 0  ;;  %s2209_s20 = scalar_lea.sflag [#allocation4], %s2208_s23 }
 0x40f   : > { %p2586_p4 = pnand %p2591_p2, %p3587_p3 }
 0x411   : > { %2825 = dma.done.wait (!%p2586_p4), %s2209_s20, 32  }
 0x412   : > { %2827 = vsyncadd (!%p2586_p4), %s2209_s20, 4294967264  ;;  %p19_p7 = scmp.ge.s32.totalorder %s2919_s11, 4   ;;  %s3588_s27 = smov %s2834_s28 }
 0x413   : > { %s3589_s28 = smov %s2838_s29  ;;  %s3590_s29 = smov %s2930_s14 }
 0x414   : > { %s3591_s30 = smov %s2919_s11  ;;  %21 = sbr.rel (!%p19_p7) target bundleno = 4 (0x4), region = 92 }
 0x41b   :  { %2214 = vsyncpa [#allocation3], 1 }
 0x41c   :  { %2216 = vsyncpa [#allocation3 + $0x1], 1 }
 0x41d   :  { %2217 = vsyncpa [#allocation4], 1 }
 0x41e   :  { %2219 = vsyncpa [#allocation4 + $0x1], 1 }

</bundles_post_ra>
